<compile_context>
chip_gen: v6e
topology: v6e:2x2x1
jax: 0.10.0
libtpu: 0.0.40
codegen_flags: <defaults>
</compile_context>

<pallas_src>
import functools
import numpy as np

import jax
import jax.numpy as jnp
from jax.experimental import pallas as pl
from jax.experimental.pallas import tpu as pltpu

# ---------------- small ViT/BEiT-like config (scaled down) -------------------
IMG = 32                    # processor resize target (real model: 224)
PATCH = 16
GRID = IMG // PATCH         # 2
NUM_PATCHES = GRID * GRID   # 4
SEQ = NUM_PATCHES + 1       # +CLS = 5
SEQ_PAD = 8                 # pad tokens to a full sublane group
CHANNELS = 3
HIDDEN = 128                # real model: 768
HEADS = 4
HEAD_DIM = HIDDEN // HEADS  # 32
INTERMEDIATE = 4 * HIDDEN
LAYERS = 2                  # real model: 12
NUM_LABELS = 171
PAD_LABELS = 256            # lane-dense classifier output, sliced back to 171
LN_EPS = 1e-12
LAYER_SCALE_INIT = 0.1
PATCH_DIM = CHANNELS * PATCH * PATCH
ATTN_SCALE = 1.0 / float(np.sqrt(HEAD_DIM))
NEG_INF = -1e9              # mask value for pad tokens / cross-batch attention


def _ln(x, g, b):
    mu = jnp.mean(x, axis=-1, keepdims=True)
    var = jnp.mean(jnp.square(x - mu), axis=-1, keepdims=True)
    return (x - mu) * jax.lax.rsqrt(var + LN_EPS) * g + b


# ------------------------- fused backbone kernel -----------------------------
def _fused_vit_kernel(
    patches_ref, tok_init_ref, patch_w_ref,
    ln1_g_ref, ln1_b_ref, wqkv_ref, bqkv_ref, bias_ref,
    wo_ref, bo_ref, lam1_ref, ln2_g_ref, ln2_b_ref,
    w1_ref, b1_ref, w2_ref, b2_ref, lam2_ref,
    pool_g_ref, pool_b_ref, cls_w_ref, cls_b_ref,
    o_ref, resid_ref, ctx_ref, *, batch):
    l = pl.program_id(0)

    # ---- step 0: patch-embed matmul + token init (CLS/bias baked in tok_init) ----
    @pl.when(l == 0)
    def _():
        emb = jnp.dot(patches_ref[...], patch_w_ref[...],
                      preferred_element_type=jnp.float32)     # [B*SEQ_PAD, H]
        resid_ref[...] = emb + tok_init_ref[...]

    h = resid_ref[...]                                        # [B*SEQ_PAD, H] f32

    # ---- attention block (pre-LN, rel-pos bias + block-diag batch mask) ----
    xn = _ln(h, ln1_g_ref[0], ln1_b_ref[0])
    qkv = jnp.dot(xn.astype(jnp.bfloat16), wqkv_ref[0],
                  preferred_element_type=jnp.float32) + bqkv_ref[0]   # [B*S, 3H]

    for hd in range(HEADS):                                   # static unroll
        q = qkv[:, hd * HEAD_DIM:(hd + 1) * HEAD_DIM].astype(jnp.bfloat16)
        k = qkv[:, HIDDEN + hd * HEAD_DIM:
                   HIDDEN + (hd + 1) * HEAD_DIM].astype(jnp.bfloat16)
        v = qkv[:, 2 * HIDDEN + hd * HEAD_DIM:
                   2 * HIDDEN + (hd + 1) * HEAD_DIM].astype(jnp.bfloat16)
        s = jax.lax.dot_general(q, k, (((1,), (1,)), ((), ())),
                                preferred_element_type=jnp.float32)   # [BS, BS]
        s = s * ATTN_SCALE + bias_ref[0, hd]   # rel-pos bias, pad & cross-batch masked
        m = jnp.max(s, axis=-1, keepdims=True)
        p = jnp.exp(s - m)
        p = p * pl.reciprocal(jnp.sum(p, axis=-1, keepdims=True), approx=True)
        ctx = jnp.dot(p.astype(jnp.bfloat16), v,
                      preferred_element_type=jnp.float32)             # [BS, Dh]
        ctx_ref[:, hd * HEAD_DIM:(hd + 1) * HEAD_DIM] = ctx

    attn = jnp.dot(ctx_ref[...].astype(jnp.bfloat16), wo_ref[0],
                   preferred_element_type=jnp.float32) + bo_ref[0]
    h1 = h + lam1_ref[0] * attn                               # layer-scale + residual

    # ---- MLP block (pre-LN, GELU, layer scale) ----
    xn2 = _ln(h1, ln2_g_ref[0], ln2_b_ref[0])
    # TODO(synk): HF BEiT/ViT uses exact erf-GELU; tanh-approx GELU used for guaranteed Mosaic lowering.
    m1 = jax.nn.gelu(jnp.dot(xn2.astype(jnp.bfloat16), w1_ref[0],
                             preferred_element_type=jnp.float32) + b1_ref[0],
                     approximate=True)
    m2 = jnp.dot(m1.astype(jnp.bfloat16), w2_ref[0],
                 preferred_element_type=jnp.float32) + b2_ref[0]
    h2 = h1 + lam2_ref[0] * m2                                # layer-scale + residual
    resid_ref[...] = h2

    # ---- last step: fused mean-pool + pooler LN + lane-padded classifier ----
    @pl.when(l == LAYERS - 1)
    def _():
        tok = h2.reshape(batch, SEQ_PAD, HIDDEN)
        pooled = jnp.mean(tok[:, 1:1 + NUM_PATCHES, :], axis=1)       # [B, H]
        y = _ln(pooled, pool_g_ref[...], pool_b_ref[...])
        o_ref[...] = jnp.dot(y.astype(jnp.bfloat16), cls_w_ref[...],
                             preferred_element_type=jnp.float32) + cls_b_ref[...]


def fused_vit_forward(patches_pad, packed):
    B = packed["tok_init"].shape[0] // SEQ_PAD
    stk = packed["stacked"]

    def bcast(shape):
        nd = len(shape)
        return pl.BlockSpec(shape, lambda l: (0,) * nd)

    def per_layer(shape):
        nd = len(shape)
        return pl.BlockSpec((1,) + shape, lambda l: (l,) + (0,) * nd)

    in_specs = [
        bcast((B * SEQ_PAD, PATCH_DIM)),                          # patches
        bcast((B * SEQ_PAD, HIDDEN)),                             # token init
        bcast((PATCH_DIM, HIDDEN)),                               # patch_w
        per_layer((1, HIDDEN)), per_layer((1, HIDDEN)),           # ln1 g/b
        per_layer((HIDDEN, 3 * HIDDEN)), per_layer((1, 3 * HIDDEN)),  # wqkv/bqkv
        per_layer((HEADS, B * SEQ_PAD, B * SEQ_PAD)),             # rel-pos bias
        per_layer((HIDDEN, HIDDEN)), per_layer((1, HIDDEN)),      # wo/bo
        per_layer((1, HIDDEN)),                                   # lambda1
        per_layer((1, HIDDEN)), per_layer((1, HIDDEN)),           # ln2 g/b
        per_layer((HIDDEN, INTERMEDIATE)), per_layer((1, INTERMEDIATE)),  # w1/b1
        per_layer((INTERMEDIATE, HIDDEN)), per_layer((1, HIDDEN)),        # w2/b2
        per_layer((1, HIDDEN)),                                   # lambda2
        bcast((1, HIDDEN)), bcast((1, HIDDEN)),                   # pooler LN g/b
        bcast((HIDDEN, PAD_LABELS)), bcast((1, PAD_LABELS)),      # classifier w/b
    ]
    operands = (
        patches_pad, packed["tok_init"], packed["patch_w"],
        stk["ln1_g"], stk["ln1_b"], stk["wqkv"], stk["bqkv"], stk["bias"],
        stk["wo"], stk["bo"], stk["lam1"], stk["ln2_g"], stk["ln2_b"],
        stk["w1"], stk["b1"], stk["w2"], stk["b2"], stk["lam2"],
        packed["pool_g"], packed["pool_b"], packed["cls_w"], packed["cls_b"],
    )
    return pl.pallas_call(
        functools.partial(_fused_vit_kernel, batch=B),
        out_shape=jax.ShapeDtypeStruct((B, PAD_LABELS), jnp.float32),
        grid=(LAYERS,),
        in_specs=in_specs,
        out_specs=pl.BlockSpec((B, PAD_LABELS), lambda l: (0, 0)),
        scratch_shapes=[
            pltpu.VMEM((B * SEQ_PAD, HIDDEN), jnp.float32),   # residual stream
            pltpu.VMEM((B * SEQ_PAD, HIDDEN), jnp.float32),   # per-head ctx assembly
        ],
        compiler_params=pltpu.CompilerParams(
            dimension_semantics=("arbitrary",)),              # layer axis carries state
    )(*operands)


# --------------------- parameters (deterministic, synthetic) -----------------
def _relative_position_index(window):
    wh, ww = window
    num_rel = (2 * wh - 1) * (2 * ww - 1) + 3
    coords = np.stack(np.meshgrid(np.arange(wh), np.arange(ww), indexing="ij"))
    cf = coords.reshape(2, -1)
    rel = (cf[:, :, None] - cf[:, None, :]).transpose(1, 2, 0).astype(np.int64)
    rel[:, :, 0] += wh - 1
    rel[:, :, 1] += ww - 1
    rel[:, :, 0] *= 2 * ww - 1
    idx = np.zeros((wh * ww + 1, wh * ww + 1), dtype=np.int64)
    idx[1:, 1:] = rel.sum(-1)
    idx[0, 0:] = num_rel - 3
    idx[0:, 0] = num_rel - 2
    idx[0, 0] = num_rel - 1
    return idx, num_rel


def init_params(key):
    keys = jax.random.split(key, 64)
    ki = iter(keys)

    def nrm(shape, std=0.02):
        return (std * jax.random.normal(next(ki), shape)).astype(jnp.float32)

    rel_idx, num_rel = _relative_position_index((GRID, GRID))
    params = {
        "cls_token": nrm((1, 1, HIDDEN)),
        "patch_w": nrm((HIDDEN, CHANNELS, PATCH, PATCH)),   # conv weight, OIHW
        "patch_b": jnp.zeros((HIDDEN,), jnp.float32),
        "rel_idx": jnp.asarray(rel_idx, jnp.int32),
        "pool_ln_g": jnp.ones((HIDDEN,), jnp.float32),
        "pool_ln_b": jnp.zeros((HIDDEN,), jnp.float32),
        "cls_w": nrm((HIDDEN, NUM_LABELS)),
        "cls_b": jnp.zeros((NUM_LABELS,), jnp.float32),
    }
    layers = []
    for _ in range(LAYERS):
        wq, wk, wv = nrm((HIDDEN, HIDDEN)), nrm((HIDDEN, HIDDEN)), nrm((HIDDEN, HIDDEN))
        bq = jnp.zeros((HIDDEN,), jnp.float32)
        bv = jnp.zeros((HIDDEN,), jnp.float32)
        layers.append(dict(
            ln1_g=jnp.ones((HIDDEN,), jnp.float32), ln1_b=jnp.zeros((HIDDEN,), jnp.float32),
            # fused QKV projection; key projection carries no bias (BEiT convention)
            wqkv=jnp.concatenate([wq, wk, wv], axis=1),
            bqkv=jnp.concatenate([bq, jnp.zeros((HIDDEN,), jnp.float32), bv]),
            wo=nrm((HIDDEN, HIDDEN)), bo=jnp.zeros((HIDDEN,), jnp.float32),
            rel_table=nrm((num_rel, HEADS)),
            lambda1=jnp.full((HIDDEN,), LAYER_SCALE_INIT, jnp.float32),
            lambda2=jnp.full((HIDDEN,), LAYER_SCALE_INIT, jnp.float32),
            ln2_g=jnp.ones((HIDDEN,), jnp.float32), ln2_b=jnp.zeros((HIDDEN,), jnp.float32),
            w1=nrm((HIDDEN, INTERMEDIATE)), b1=jnp.zeros((INTERMEDIATE,), jnp.float32),
            w2=nrm((INTERMEDIATE, HIDDEN)), b2=jnp.zeros((HIDDEN,), jnp.float32),
        ))
    params["layers"] = layers
    return params


def pack_params(params, batch):
    """One-time (outside-jit) conversion to the kernel-friendly inference layout:
    stacked per-layer weights, bf16 matmul weights, pre-gathered + padded + batch
    block-diagonal relative-position bias, padded classifier, token-init slab."""
    Ls = params["layers"]

    def stack(name, dtype=jnp.float32, as_row=False):
        arrs = [L[name] for L in Ls]
        if as_row:
            arrs = [a.reshape(1, -1) for a in arrs]
        return jnp.stack(arrs).astype(dtype)

    # relative-position bias: gather -> pad SEQ->SEQ_PAD -> block-diag over batch
    rel_idx = np.asarray(params["rel_idx"])
    bias_layers = []
    for L in Ls:
        tbl = np.asarray(L["rel_table"], np.float32)                # [num_rel, HEADS]
        b = tbl[rel_idx].transpose(2, 0, 1)                         # [HEADS, SEQ, SEQ]
        bp = np.full((HEADS, SEQ_PAD, SEQ_PAD), NEG_INF, np.float32)
        bp[:, :SEQ, :SEQ] = b
        full = np.full((HEADS, batch * SEQ_PAD, batch * SEQ_PAD), NEG_INF, np.float32)
        for bi in range(batch):
            full[:, bi * SEQ_PAD:(bi + 1) * SEQ_PAD,
                 bi * SEQ_PAD:(bi + 1) * SEQ_PAD] = bp
        bias_layers.append(full)

    stacked = dict(
        ln1_g=stack("ln1_g", as_row=True), ln1_b=stack("ln1_b", as_row=True),
        wqkv=stack("wqkv", jnp.bfloat16), bqkv=stack("bqkv", as_row=True),
        bias=jnp.asarray(np.stack(bias_layers)),
        wo=stack("wo", jnp.bfloat16), bo=stack("bo", as_row=True),
        lam1=stack("lambda1", as_row=True),
        ln2_g=stack("ln2_g", as_row=True), ln2_b=stack("ln2_b", as_row=True),
        w1=stack("w1", jnp.bfloat16), b1=stack("b1", as_row=True),
        w2=stack("w2", jnp.bfloat16), b2=stack("b2", as_row=True),
        lam2=stack("lambda2", as_row=True),
    )

    # token-init slab: CLS token at row b*SEQ_PAD, patch bias at patch rows, 0 at pad
    tok_init = np.zeros((batch * SEQ_PAD, HIDDEN), np.float32)
    cls = np.asarray(params["cls_token"]).reshape(HIDDEN)
    pb = np.asarray(params["patch_b"])
    for bi in range(batch):
        tok_init[bi * SEQ_PAD] = cls
        tok_init[bi * SEQ_PAD + 1: bi * SEQ_PAD + 1 + NUM_PATCHES] = pb

    return dict(
        stacked=stacked,
        tok_init=jnp.asarray(tok_init),
        patch_w=params["patch_w"].reshape(HIDDEN, PATCH_DIM).T.astype(jnp.bfloat16),
        pool_g=params["pool_ln_g"].reshape(1, HIDDEN),
        pool_b=params["pool_ln_b"].reshape(1, HIDDEN),
        cls_w=jnp.pad(params["cls_w"],
                      ((0, 0), (0, PAD_LABELS - NUM_LABELS))).astype(jnp.bfloat16),
        cls_b=jnp.pad(params["cls_b"],
                      ((0, PAD_LABELS - NUM_LABELS),)).reshape(1, PAD_LABELS),
    )


# ------------------------------ forward pass ---------------------------------
def only_vpt_forward(img, packed):
    """OnlyVPT.forward: vpt_2d(img) -> img_output (classification logits)."""
    B = img.shape[0]

    # ---- image processor: resize -> rescale(1/255) -> normalize(0.5/0.5) ----
    # TODO(synk): PIL bicubic resize inside the HF processor has no exact Pallas equivalent; jax.image.resize used.
    x = jax.image.resize(img, (B, CHANNELS, IMG, IMG), method="bicubic")
    x = x * (1.0 / 255.0)
    x = (x - 0.5) / 0.5

    # ---- patch extraction: Conv2d(kernel=stride=PATCH) == reshape (+ in-kernel matmul) ----
    patches = x.reshape(B, CHANNELS, GRID, PATCH, GRID, PATCH)
    patches = patches.transpose(0, 2, 4, 1, 3, 5).reshape(B, NUM_PATCHES, PATCH_DIM)
    # lay patches into the padded token grid: row 0 = CLS slot (zeros), 1..4 patches, 5..7 pad
    patches_pad = jnp.pad(patches, ((0, 0), (1, SEQ_PAD - SEQ), (0, 0)))
    patches_pad = patches_pad.reshape(B * SEQ_PAD, PATCH_DIM).astype(jnp.bfloat16)

    # ---- single fused kernel: patch-embed + LAYERS transformer layers + head ----
    logits = fused_vit_forward(patches_pad, packed)
    return logits[:, :NUM_LABELS]


if __name__ == "__main__":
    key = jax.random.PRNGKey(0)
    kp, kimg = jax.random.split(key)
    params = init_params(kp)
    # raw NCHW image batch in [0, 255]
    img = jax.random.uniform(kimg, (2, 3, 40, 40), jnp.float32, 0.0, 255.0)
    packed = pack_params(params, batch=img.shape[0])

    logits = jax.jit(only_vpt_forward)(img, packed)
    logits = jax.block_until_ready(logits)
    assert logits.shape == (2, NUM_LABELS)
    assert bool(jnp.all(jnp.isfinite(logits)))
    print("KERNEL_OK")
</pallas_src>

<mosaic_0001>
module attributes {stable_mosaic.version = 11 : i64} {
  func.func @_fused_vit_kernel(%arg0: i32, %arg1: memref<16x768xbf16, #tpu.memory_space<vmem>>, %arg2: memref<16x128xf32, #tpu.memory_space<vmem>>, %arg3: memref<768x128xbf16, #tpu.memory_space<vmem>>, %arg4: memref<1x1x128xf32, #tpu.memory_space<vmem>>, %arg5: memref<1x1x128xf32, #tpu.memory_space<vmem>>, %arg6: memref<1x128x384xbf16, #tpu.memory_space<vmem>>, %arg7: memref<1x1x384xf32, #tpu.memory_space<vmem>>, %arg8: memref<1x4x16x16xf32, #tpu.memory_space<vmem>>, %arg9: memref<1x128x128xbf16, #tpu.memory_space<vmem>>, %arg10: memref<1x1x128xf32, #tpu.memory_space<vmem>>, %arg11: memref<1x1x128xf32, #tpu.memory_space<vmem>>, %arg12: memref<1x1x128xf32, #tpu.memory_space<vmem>>, %arg13: memref<1x1x128xf32, #tpu.memory_space<vmem>>, %arg14: memref<1x128x512xbf16, #tpu.memory_space<vmem>>, %arg15: memref<1x1x512xf32, #tpu.memory_space<vmem>>, %arg16: memref<1x512x128xbf16, #tpu.memory_space<vmem>>, %arg17: memref<1x1x128xf32, #tpu.memory_space<vmem>>, %arg18: memref<1x1x128xf32, #tpu.memory_space<vmem>>, %arg19: memref<1x128xf32, #tpu.memory_space<vmem>>, %arg20: memref<1x128xf32, #tpu.memory_space<vmem>>, %arg21: memref<128x256xbf16, #tpu.memory_space<vmem>>, %arg22: memref<1x256xf32, #tpu.memory_space<vmem>>, %arg23: memref<2x256xf32, #tpu.memory_space<vmem>>, %arg24: memref<16x128xf32, #tpu.memory_space<vmem>>, %arg25: memref<16x128xf32, #tpu.memory_space<vmem>>) attributes {dimension_semantics = [#tpu.dimension_semantics<arbitrary>], iteration_bounds = array<i64: 2>, scalar_prefetch = 0 : i64, scratch_operands = 2 : i64, tpu.core_type = #tpu.core_type<tc>, window_params = [{pipeline_mode = #tpu.pipeline_mode<synchronous>, transform_indices = @transform_0, window_bounds = array<i64: 16, 768>}, {pipeline_mode = #tpu.pipeline_mode<synchronous>, transform_indices = @transform_1, window_bounds = array<i64: 16, 128>}, {pipeline_mode = #tpu.pipeline_mode<synchronous>, transform_indices = @transform_2, window_bounds = array<i64: 768, 128>}, {transform_indices = @transform_3, window_bounds = array<i64: 1, 1, 128>}, {transform_indices = @transform_4, window_bounds = array<i64: 1, 1, 128>}, {transform_indices = @transform_5, window_bounds = array<i64: 1, 128, 384>}, {transform_indices = @transform_6, window_bounds = array<i64: 1, 1, 384>}, {transform_indices = @transform_7, window_bounds = array<i64: 1, 4, 16, 16>}, {transform_indices = @transform_8, window_bounds = array<i64: 1, 128, 128>}, {transform_indices = @transform_9, window_bounds = array<i64: 1, 1, 128>}, {transform_indices = @transform_10, window_bounds = array<i64: 1, 1, 128>}, {transform_indices = @transform_11, window_bounds = array<i64: 1, 1, 128>}, {transform_indices = @transform_12, window_bounds = array<i64: 1, 1, 128>}, {transform_indices = @transform_13, window_bounds = array<i64: 1, 128, 512>}, {transform_indices = @transform_14, window_bounds = array<i64: 1, 1, 512>}, {transform_indices = @transform_15, window_bounds = array<i64: 1, 512, 128>}, {transform_indices = @transform_16, window_bounds = array<i64: 1, 1, 128>}, {transform_indices = @transform_17, window_bounds = array<i64: 1, 1, 128>}, {pipeline_mode = #tpu.pipeline_mode<synchronous>, transform_indices = @transform_18, window_bounds = array<i64: 1, 128>}, {pipeline_mode = #tpu.pipeline_mode<synchronous>, transform_indices = @transform_19, window_bounds = array<i64: 1, 128>}, {pipeline_mode = #tpu.pipeline_mode<synchronous>, transform_indices = @transform_20, window_bounds = array<i64: 128, 256>}, {pipeline_mode = #tpu.pipeline_mode<synchronous>, transform_indices = @transform_21, window_bounds = array<i64: 1, 256>}, {pipeline_mode = #tpu.pipeline_mode<synchronous>, transform_indices = @transform_22, window_bounds = array<i64: 2, 256>}]} {
    %c0_i32 = arith.constant 0 : i32
    %0 = arith.cmpi eq, %arg0, %c0_i32 : i32
    %1 = arith.extui %0 : i1 to i32
    %c0_i32_0 = arith.constant 0 : i32
    %2 = arith.cmpi ne, %1, %c0_i32_0 : i32
    scf.if %2 {
      %c0_104 = arith.constant 0 : index
      %c0_105 = arith.constant 0 : index
      %216 = vector.load %arg1[%c0_104, %c0_105] : memref<16x768xbf16, #tpu.memory_space<vmem>>, vector<16x768xbf16>
      %c0_106 = arith.constant 0 : index
      %c0_107 = arith.constant 0 : index
      %217 = vector.load %arg3[%c0_106, %c0_107] : memref<768x128xbf16, #tpu.memory_space<vmem>>, vector<768x128xbf16>
      %cst_108 = arith.constant dense<0.000000e+00> : vector<16x128xf32>
      %218 = tpu.matmul %216, %217, %cst_108 {dimension_numbers = #tpu.dot_dimension_numbers<[1], [0], [0], [1], [0, 0, 1, 1], [], []>} : vector<16x768xbf16>, vector<768x128xbf16>, vector<16x128xf32> -> vector<16x128xf32>
      %c0_109 = arith.constant 0 : index
      %c0_110 = arith.constant 0 : index
      %219 = vector.load %arg2[%c0_109, %c0_110] : memref<16x128xf32, #tpu.memory_space<vmem>>, vector<16x128xf32>
      %220 = arith.addf %218, %219 : vector<16x128xf32>
      %c0_111 = arith.constant 0 : index
      %c0_112 = arith.constant 0 : index
      %221 = vector.load %arg24[%c0_111, %c0_112] : memref<16x128xf32, #tpu.memory_space<vmem>>, vector<16x128xf32>
      tpu.vector_store %arg24[%c0_111, %c0_112], %220 {strides = array<i32>} : memref<16x128xf32, #tpu.memory_space<vmem>>, vector<16x128xf32>,
    } else {
    }
    %c0 = arith.constant 0 : index
    %c0_1 = arith.constant 0 : index
    %3 = vector.load %arg24[%c0, %c0_1] : memref<16x128xf32, #tpu.memory_space<vmem>>, vector<16x128xf32>
    %c0_2 = arith.constant 0 : index
    %c0_3 = arith.constant 0 : index
    %c0_4 = arith.constant 0 : index
    %4 = vector.load %arg4[%c0_2, %c0_3, %c0_4] : memref<1x1x128xf32, #tpu.memory_space<vmem>>, vector<1x1x128xf32>
    %5 = vector.shape_cast %4 : vector<1x1x128xf32> to vector<1x128xf32>
    %c0_5 = arith.constant 0 : index
    %c0_6 = arith.constant 0 : index
    %c0_7 = arith.constant 0 : index
    %6 = vector.load %arg5[%c0_5, %c0_6, %c0_7] : memref<1x1x128xf32, #tpu.memory_space<vmem>>, vector<1x1x128xf32>
    %7 = vector.shape_cast %6 : vector<1x1x128xf32> to vector<1x128xf32>
    %cst = arith.constant dense<0.000000e+00> : vector<16xf32>
    %8 = vector.multi_reduction <add>, %3, %cst [1] : vector<16x128xf32> to vector<16xf32>
    %9 = vector.shape_cast %8 : vector<16xf32> to vector<16x1xf32>
    %cst_8 = arith.constant 1.280000e+02 : f32
    %10 = vector.broadcast %cst_8 : f32 to vector<16x1xf32>
    %11 = arith.divf %9, %10 : vector<16x1xf32>
    %12 = vector.broadcast %11 : vector<16x1xf32> to vector<16x128xf32>
    %13 = arith.subf %3, %12 : vector<16x128xf32>
    %14 = arith.mulf %13, %13 : vector<16x128xf32>
    %cst_9 = arith.constant dense<0.000000e+00> : vector<16xf32>
    %15 = vector.multi_reduction <add>, %14, %cst_9 [1] : vector<16x128xf32> to vector<16xf32>
    %16 = vector.shape_cast %15 : vector<16xf32> to vector<16x1xf32>
    %cst_10 = arith.constant 1.280000e+02 : f32
    %17 = vector.broadcast %cst_10 : f32 to vector<16x1xf32>
    %18 = arith.divf %16, %17 : vector<16x1xf32>
    %19 = vector.broadcast %11 : vector<16x1xf32> to vector<16x128xf32>
    %20 = arith.subf %3, %19 : vector<16x128xf32>
    %cst_11 = arith.constant 9.99999996E-13 : f32
    %21 = vector.broadcast %cst_11 : f32 to vector<16x1xf32>
    %22 = arith.addf %18, %21 : vector<16x1xf32>
    %23 = math.rsqrt %22 : vector<16x1xf32>
    %24 = vector.broadcast %23 : vector<16x1xf32> to vector<16x128xf32>
    %25 = arith.mulf %20, %24 : vector<16x128xf32>
    %26 = vector.broadcast %5 : vector<1x128xf32> to vector<16x128xf32>
    %27 = arith.mulf %25, %26 : vector<16x128xf32>
    %28 = vector.broadcast %7 : vector<1x128xf32> to vector<16x128xf32>
    %29 = arith.addf %27, %28 : vector<16x128xf32>
    %30 = arith.truncf %29 : vector<16x128xf32> to vector<16x128xbf16>
    %c0_12 = arith.constant 0 : index
    %c0_13 = arith.constant 0 : index
    %c0_14 = arith.constant 0 : index
    %31 = vector.load %arg6[%c0_12, %c0_13, %c0_14] : memref<1x128x384xbf16, #tpu.memory_space<vmem>>, vector<1x128x384xbf16>
    %32 = vector.shape_cast %31 : vector<1x128x384xbf16> to vector<128x384xbf16>
    %cst_15 = arith.constant dense<0.000000e+00> : vector<16x384xf32>
    %33 = tpu.matmul %30, %32, %cst_15 {dimension_numbers = #tpu.dot_dimension_numbers<[1], [0], [0], [1], [0, 0, 1, 1], [], []>} : vector<16x128xbf16>, vector<128x384xbf16>, vector<16x384xf32> -> vector<16x384xf32>
    %c0_16 = arith.constant 0 : index
    %c0_17 = arith.constant 0 : index
    %c0_18 = arith.constant 0 : index
    %34 = vector.load %arg7[%c0_16, %c0_17, %c0_18] : memref<1x1x384xf32, #tpu.memory_space<vmem>>, vector<1x1x384xf32>
    %35 = vector.shape_cast %34 : vector<1x1x384xf32> to vector<1x384xf32>
    %36 = vector.broadcast %35 : vector<1x384xf32> to vector<16x384xf32>
    %37 = arith.addf %33, %36 : vector<16x384xf32>
    %38 = vector.extract_strided_slice %37 {offsets = [0, 0], sizes = [16, 32], strides = [1, 1]} : vector<16x384xf32> to vector<16x32xf32>
    %39 = arith.truncf %38 : vector<16x32xf32> to vector<16x32xbf16>
    %40 = vector.extract_strided_slice %37 {offsets = [0, 128], sizes = [16, 32], strides = [1, 1]} : vector<16x384xf32> to vector<16x32xf32>
    %41 = arith.truncf %40 : vector<16x32xf32> to vector<16x32xbf16>
    %42 = vector.extract_strided_slice %37 {offsets = [0, 256], sizes = [16, 32], strides = [1, 1]} : vector<16x384xf32> to vector<16x32xf32>
    %43 = arith.truncf %42 : vector<16x32xf32> to vector<16x32xbf16>
    %cst_19 = arith.constant dense<0.000000e+00> : vector<16x16xf32>
    %44 = tpu.matmul %39, %41, %cst_19 {dimension_numbers = #tpu.dot_dimension_numbers<[1], [1], [0], [0], [0, 0, 1, 0], [], []>} : vector<16x32xbf16>, vector<16x32xbf16>, vector<16x16xf32> -> vector<16x16xf32>
    %cst_20 = arith.constant 0.176776692 : f32
    %45 = vector.broadcast %cst_20 : f32 to vector<16x16xf32>
    %46 = arith.mulf %44, %45 : vector<16x16xf32>
    %c0_21 = arith.constant 0 : index
    %c0_22 = arith.constant 0 : index
    %c0_23 = arith.constant 0 : index
    %c0_24 = arith.constant 0 : index
    %47 = vector.load %arg8[%c0_21, %c0_22, %c0_23, %c0_24] : memref<1x4x16x16xf32, #tpu.memory_space<vmem>>, vector<1x1x16x16xf32>
    %48 = vector.shape_cast %47 : vector<1x1x16x16xf32> to vector<16x16xf32>
    %49 = arith.addf %46, %48 : vector<16x16xf32>
    %cst_25 = arith.constant dense<0xFF800000> : vector<16xf32>
    %50 = vector.multi_reduction <maximumf>, %49, %cst_25 [1] : vector<16x16xf32> to vector<16xf32>
    %51 = vector.shape_cast %50 : vector<16xf32> to vector<16x1xf32>
    %52 = vector.broadcast %51 : vector<16x1xf32> to vector<16x16xf32>
    %53 = arith.subf %49, %52 : vector<16x16xf32>
    %54 = math.exp %53 : vector<16x16xf32>
    %cst_26 = arith.constant dense<0.000000e+00> : vector<16xf32>
    %55 = vector.multi_reduction <add>, %54, %cst_26 [1] : vector<16x16xf32> to vector<16xf32>
    %56 = vector.shape_cast %55 : vector<16xf32> to vector<16x1xf32>
    %57 = tpu.reciprocal %56 {approx = true} : vector<16x1xf32> -> vector<16x1xf32>
    %58 = vector.broadcast %57 : vector<16x1xf32> to vector<16x16xf32>
    %59 = arith.mulf %54, %58 : vector<16x16xf32>
    %60 = arith.truncf %59 : vector<16x16xf32> to vector<16x16xbf16>
    %cst_27 = arith.constant dense<0.000000e+00> : vector<16x32xf32>
    %61 = tpu.matmul %60, %43, %cst_27 {dimension_numbers = #tpu.dot_dimension_numbers<[1], [0], [0], [1], [0, 0, 1, 1], [], []>} : vector<16x16xbf16>, vector<16x32xbf16>, vector<16x32xf32> -> vector<16x32xf32>
    %c0_28 = arith.constant 0 : index
    %c0_29 = arith.constant 0 : index
    %62 = vector.load %arg25[%c0_28, %c0_29] : memref<16x128xf32, #tpu.memory_space<vmem>>, vector<16x32xf32>
    tpu.vector_store %arg25[%c0_28, %c0_29], %61 {strides = array<i32>} : memref<16x128xf32, #tpu.memory_space<vmem>>, vector<16x32xf32>,
    %63 = vector.extract_strided_slice %37 {offsets = [0, 32], sizes = [16, 32], strides = [1, 1]} : vector<16x384xf32> to vector<16x32xf32>
    %64 = arith.truncf %63 : vector<16x32xf32> to vector<16x32xbf16>
    %65 = vector.extract_strided_slice %37 {offsets = [0, 160], sizes = [16, 32], strides = [1, 1]} : vector<16x384xf32> to vector<16x32xf32>
    %66 = arith.truncf %65 : vector<16x32xf32> to vector<16x32xbf16>
    %67 = vector.extract_strided_slice %37 {offsets = [0, 288], sizes = [16, 32], strides = [1, 1]} : vector<16x384xf32> to vector<16x32xf32>
    %68 = arith.truncf %67 : vector<16x32xf32> to vector<16x32xbf16>
    %cst_30 = arith.constant dense<0.000000e+00> : vector<16x16xf32>
    %69 = tpu.matmul %64, %66, %cst_30 {dimension_numbers = #tpu.dot_dimension_numbers<[1], [1], [0], [0], [0, 0, 1, 0], [], []>} : vector<16x32xbf16>, vector<16x32xbf16>, vector<16x16xf32> -> vector<16x16xf32>
    %cst_31 = arith.constant 0.176776692 : f32
    %70 = vector.broadcast %cst_31 : f32 to vector<16x16xf32>
    %71 = arith.mulf %69, %70 : vector<16x16xf32>
    %c0_32 = arith.constant 0 : index
    %c1 = arith.constant 1 : index
    %c0_33 = arith.constant 0 : index
    %c0_34 = arith.constant 0 : index
    %72 = vector.load %arg8[%c0_32, %c1, %c0_33, %c0_34] : memref<1x4x16x16xf32, #tpu.memory_space<vmem>>, vector<1x1x16x16xf32>
    %73 = vector.shape_cast %72 : vector<1x1x16x16xf32> to vector<16x16xf32>
    %74 = arith.addf %71, %73 : vector<16x16xf32>
    %cst_35 = arith.constant dense<0xFF800000> : vector<16xf32>
    %75 = vector.multi_reduction <maximumf>, %74, %cst_35 [1] : vector<16x16xf32> to vector<16xf32>
    %76 = vector.shape_cast %75 : vector<16xf32> to vector<16x1xf32>
    %77 = vector.broadcast %76 : vector<16x1xf32> to vector<16x16xf32>
    %78 = arith.subf %74, %77 : vector<16x16xf32>
    %79 = math.exp %78 : vector<16x16xf32>
    %cst_36 = arith.constant dense<0.000000e+00> : vector<16xf32>
    %80 = vector.multi_reduction <add>, %79, %cst_36 [1] : vector<16x16xf32> to vector<16xf32>
    %81 = vector.shape_cast %80 : vector<16xf32> to vector<16x1xf32>
    %82 = tpu.reciprocal %81 {approx = true} : vector<16x1xf32> -> vector<16x1xf32>
    %83 = vector.broadcast %82 : vector<16x1xf32> to vector<16x16xf32>
    %84 = arith.mulf %79, %83 : vector<16x16xf32>
    %85 = arith.truncf %84 : vector<16x16xf32> to vector<16x16xbf16>
    %cst_37 = arith.constant dense<0.000000e+00> : vector<16x32xf32>
    %86 = tpu.matmul %85, %68, %cst_37 {dimension_numbers = #tpu.dot_dimension_numbers<[1], [0], [0], [1], [0, 0, 1, 1], [], []>} : vector<16x16xbf16>, vector<16x32xbf16>, vector<16x32xf32> -> vector<16x32xf32>
    %c0_38 = arith.constant 0 : index
    %c32 = arith.constant 32 : index
    %87 = vector.load %arg25[%c0_38, %c32] : memref<16x128xf32, #tpu.memory_space<vmem>>, vector<16x32xf32>
    tpu.vector_store %arg25[%c0_38, %c32], %86 {strides = array<i32>} : memref<16x128xf32, #tpu.memory_space<vmem>>, vector<16x32xf32>,
    %88 = vector.extract_strided_slice %37 {offsets = [0, 64], sizes = [16, 32], strides = [1, 1]} : vector<16x384xf32> to vector<16x32xf32>
    %89 = arith.truncf %88 : vector<16x32xf32> to vector<16x32xbf16>
    %90 = vector.extract_strided_slice %37 {offsets = [0, 192], sizes = [16, 32], strides = [1, 1]} : vector<16x384xf32> to vector<16x32xf32>
    %91 = arith.truncf %90 : vector<16x32xf32> to vector<16x32xbf16>
    %92 = vector.extract_strided_slice %37 {offsets = [0, 320], sizes = [16, 32], strides = [1, 1]} : vector<16x384xf32> to vector<16x32xf32>
    %93 = arith.truncf %92 : vector<16x32xf32> to vector<16x32xbf16>
    %cst_39 = arith.constant dense<0.000000e+00> : vector<16x16xf32>
    %94 = tpu.matmul %89, %91, %cst_39 {dimension_numbers = #tpu.dot_dimension_numbers<[1], [1], [0], [0], [0, 0, 1, 0], [], []>} : vector<16x32xbf16>, vector<16x32xbf16>, vector<16x16xf32> -> vector<16x16xf32>
    %cst_40 = arith.constant 0.176776692 : f32
    %95 = vector.broadcast %cst_40 : f32 to vector<16x16xf32>
    %96 = arith.mulf %94, %95 : vector<16x16xf32>
    %c0_41 = arith.constant 0 : index
    %c2 = arith.constant 2 : index
    %c0_42 = arith.constant 0 : index
    %c0_43 = arith.constant 0 : index
    %97 = vector.load %arg8[%c0_41, %c2, %c0_42, %c0_43] : memref<1x4x16x16xf32, #tpu.memory_space<vmem>>, vector<1x1x16x16xf32>
    %98 = vector.shape_cast %97 : vector<1x1x16x16xf32> to vector<16x16xf32>
    %99 = arith.addf %96, %98 : vector<16x16xf32>
    %cst_44 = arith.constant dense<0xFF800000> : vector<16xf32>
    %100 = vector.multi_reduction <maximumf>, %99, %cst_44 [1] : vector<16x16xf32> to vector<16xf32>
    %101 = vector.shape_cast %100 : vector<16xf32> to vector<16x1xf32>
    %102 = vector.broadcast %101 : vector<16x1xf32> to vector<16x16xf32>
    %103 = arith.subf %99, %102 : vector<16x16xf32>
    %104 = math.exp %103 : vector<16x16xf32>
    %cst_45 = arith.constant dense<0.000000e+00> : vector<16xf32>
    %105 = vector.multi_reduction <add>, %104, %cst_45 [1] : vector<16x16xf32> to vector<16xf32>
    %106 = vector.shape_cast %105 : vector<16xf32> to vector<16x1xf32>
    %107 = tpu.reciprocal %106 {approx = true} : vector<16x1xf32> -> vector<16x1xf32>
    %108 = vector.broadcast %107 : vector<16x1xf32> to vector<16x16xf32>
    %109 = arith.mulf %104, %108 : vector<16x16xf32>
    %110 = arith.truncf %109 : vector<16x16xf32> to vector<16x16xbf16>
    %cst_46 = arith.constant dense<0.000000e+00> : vector<16x32xf32>
    %111 = tpu.matmul %110, %93, %cst_46 {dimension_numbers = #tpu.dot_dimension_numbers<[1], [0], [0], [1], [0, 0, 1, 1], [], []>} : vector<16x16xbf16>, vector<16x32xbf16>, vector<16x32xf32> -> vector<16x32xf32>
    %c0_47 = arith.constant 0 : index
    %c64 = arith.constant 64 : index
    %112 = vector.load %arg25[%c0_47, %c64] : memref<16x128xf32, #tpu.memory_space<vmem>>, vector<16x32xf32>
    tpu.vector_store %arg25[%c0_47, %c64], %111 {strides = array<i32>} : memref<16x128xf32, #tpu.memory_space<vmem>>, vector<16x32xf32>,
    %113 = vector.extract_strided_slice %37 {offsets = [0, 96], sizes = [16, 32], strides = [1, 1]} : vector<16x384xf32> to vector<16x32xf32>
    %114 = arith.truncf %113 : vector<16x32xf32> to vector<16x32xbf16>
    %115 = vector.extract_strided_slice %37 {offsets = [0, 224], sizes = [16, 32], strides = [1, 1]} : vector<16x384xf32> to vector<16x32xf32>
    %116 = arith.truncf %115 : vector<16x32xf32> to vector<16x32xbf16>
    %117 = vector.extract_strided_slice %37 {offsets = [0, 352], sizes = [16, 32], strides = [1, 1]} : vector<16x384xf32> to vector<16x32xf32>
    %118 = arith.truncf %117 : vector<16x32xf32> to vector<16x32xbf16>
    %cst_48 = arith.constant dense<0.000000e+00> : vector<16x16xf32>
    %119 = tpu.matmul %114, %116, %cst_48 {dimension_numbers = #tpu.dot_dimension_numbers<[1], [1], [0], [0], [0, 0, 1, 0], [], []>} : vector<16x32xbf16>, vector<16x32xbf16>, vector<16x16xf32> -> vector<16x16xf32>
    %cst_49 = arith.constant 0.176776692 : f32
    %120 = vector.broadcast %cst_49 : f32 to vector<16x16xf32>
    %121 = arith.mulf %119, %120 : vector<16x16xf32>
    %c0_50 = arith.constant 0 : index
    %c3 = arith.constant 3 : index
    %c0_51 = arith.constant 0 : index
    %c0_52 = arith.constant 0 : index
    %122 = vector.load %arg8[%c0_50, %c3, %c0_51, %c0_52] : memref<1x4x16x16xf32, #tpu.memory_space<vmem>>, vector<1x1x16x16xf32>
    %123 = vector.shape_cast %122 : vector<1x1x16x16xf32> to vector<16x16xf32>
    %124 = arith.addf %121, %123 : vector<16x16xf32>
    %cst_53 = arith.constant dense<0xFF800000> : vector<16xf32>
    %125 = vector.multi_reduction <maximumf>, %124, %cst_53 [1] : vector<16x16xf32> to vector<16xf32>
    %126 = vector.shape_cast %125 : vector<16xf32> to vector<16x1xf32>
    %127 = vector.broadcast %126 : vector<16x1xf32> to vector<16x16xf32>
    %128 = arith.subf %124, %127 : vector<16x16xf32>
    %129 = math.exp %128 : vector<16x16xf32>
    %cst_54 = arith.constant dense<0.000000e+00> : vector<16xf32>
    %130 = vector.multi_reduction <add>, %129, %cst_54 [1] : vector<16x16xf32> to vector<16xf32>
    %131 = vector.shape_cast %130 : vector<16xf32> to vector<16x1xf32>
    %132 = tpu.reciprocal %131 {approx = true} : vector<16x1xf32> -> vector<16x1xf32>
    %133 = vector.broadcast %132 : vector<16x1xf32> to vector<16x16xf32>
    %134 = arith.mulf %129, %133 : vector<16x16xf32>
    %135 = arith.truncf %134 : vector<16x16xf32> to vector<16x16xbf16>
    %cst_55 = arith.constant dense<0.000000e+00> : vector<16x32xf32>
    %136 = tpu.matmul %135, %118, %cst_55 {dimension_numbers = #tpu.dot_dimension_numbers<[1], [0], [0], [1], [0, 0, 1, 1], [], []>} : vector<16x16xbf16>, vector<16x32xbf16>, vector<16x32xf32> -> vector<16x32xf32>
    %c0_56 = arith.constant 0 : index
    %c96 = arith.constant 96 : index
    %137 = vector.load %arg25[%c0_56, %c96] : memref<16x128xf32, #tpu.memory_space<vmem>>, vector<16x32xf32>
    tpu.vector_store %arg25[%c0_56, %c96], %136 {strides = array<i32>} : memref<16x128xf32, #tpu.memory_space<vmem>>, vector<16x32xf32>,
    %c0_57 = arith.constant 0 : index
    %c0_58 = arith.constant 0 : index
    %138 = vector.load %arg25[%c0_57, %c0_58] : memref<16x128xf32, #tpu.memory_space<vmem>>, vector<16x128xf32>
    %139 = arith.truncf %138 : vector<16x128xf32> to vector<16x128xbf16>
    %c0_59 = arith.constant 0 : index
    %c0_60 = arith.constant 0 : index
    %c0_61 = arith.constant 0 : index
    %140 = vector.load %arg9[%c0_59, %c0_60, %c0_61] : memref<1x128x128xbf16, #tpu.memory_space<vmem>>, vector<1x128x128xbf16>
    %141 = vector.shape_cast %140 : vector<1x128x128xbf16> to vector<128x128xbf16>
    %cst_62 = arith.constant dense<0.000000e+00> : vector<16x128xf32>
    %142 = tpu.matmul %139, %141, %cst_62 {dimension_numbers = #tpu.dot_dimension_numbers<[1], [0], [0], [1], [0, 0, 1, 1], [], []>} : vector<16x128xbf16>, vector<128x128xbf16>, vector<16x128xf32> -> vector<16x128xf32>
    %c0_63 = arith.constant 0 : index
    %c0_64 = arith.constant 0 : index
    %c0_65 = arith.constant 0 : index
    %143 = vector.load %arg10[%c0_63, %c0_64, %c0_65] : memref<1x1x128xf32, #tpu.memory_space<vmem>>, vector<1x1x128xf32>
    %144 = vector.shape_cast %143 : vector<1x1x128xf32> to vector<1x128xf32>
    %145 = vector.broadcast %144 : vector<1x128xf32> to vector<16x128xf32>
    %146 = arith.addf %142, %145 : vector<16x128xf32>
    %c0_66 = arith.constant 0 : index
    %c0_67 = arith.constant 0 : index
    %c0_68 = arith.constant 0 : index
    %147 = vector.load %arg11[%c0_66, %c0_67, %c0_68] : memref<1x1x128xf32, #tpu.memory_space<vmem>>, vector<1x1x128xf32>
    %148 = vector.shape_cast %147 : vector<1x1x128xf32> to vector<1x128xf32>
    %149 = vector.broadcast %148 : vector<1x128xf32> to vector<16x128xf32>
    %150 = arith.mulf %149, %146 : vector<16x128xf32>
    %151 = arith.addf %3, %150 : vector<16x128xf32>
    %c0_69 = arith.constant 0 : index
    %c0_70 = arith.constant 0 : index
    %c0_71 = arith.constant 0 : index
    %152 = vector.load %arg12[%c0_69, %c0_70, %c0_71] : memref<1x1x128xf32, #tpu.memory_space<vmem>>, vector<1x1x128xf32>
    %153 = vector.shape_cast %152 : vector<1x1x128xf32> to vector<1x128xf32>
    %c0_72 = arith.constant 0 : index
    %c0_73 = arith.constant 0 : index
    %c0_74 = arith.constant 0 : index
    %154 = vector.load %arg13[%c0_72, %c0_73, %c0_74] : memref<1x1x128xf32, #tpu.memory_space<vmem>>, vector<1x1x128xf32>
    %155 = vector.shape_cast %154 : vector<1x1x128xf32> to vector<1x128xf32>
    %cst_75 = arith.constant dense<0.000000e+00> : vector<16xf32>
    %156 = vector.multi_reduction <add>, %151, %cst_75 [1] : vector<16x128xf32> to vector<16xf32>
    %157 = vector.shape_cast %156 : vector<16xf32> to vector<16x1xf32>
    %cst_76 = arith.constant 1.280000e+02 : f32
    %158 = vector.broadcast %cst_76 : f32 to vector<16x1xf32>
    %159 = arith.divf %157, %158 : vector<16x1xf32>
    %160 = vector.broadcast %159 : vector<16x1xf32> to vector<16x128xf32>
    %161 = arith.subf %151, %160 : vector<16x128xf32>
    %162 = arith.mulf %161, %161 : vector<16x128xf32>
    %cst_77 = arith.constant dense<0.000000e+00> : vector<16xf32>
    %163 = vector.multi_reduction <add>, %162, %cst_77 [1] : vector<16x128xf32> to vector<16xf32>
    %164 = vector.shape_cast %163 : vector<16xf32> to vector<16x1xf32>
    %cst_78 = arith.constant 1.280000e+02 : f32
    %165 = vector.broadcast %cst_78 : f32 to vector<16x1xf32>
    %166 = arith.divf %164, %165 : vector<16x1xf32>
    %167 = vector.broadcast %159 : vector<16x1xf32> to vector<16x128xf32>
    %168 = arith.subf %151, %167 : vector<16x128xf32>
    %cst_79 = arith.constant 9.99999996E-13 : f32
    %169 = vector.broadcast %cst_79 : f32 to vector<16x1xf32>
    %170 = arith.addf %166, %169 : vector<16x1xf32>
    %171 = math.rsqrt %170 : vector<16x1xf32>
    %172 = vector.broadcast %171 : vector<16x1xf32> to vector<16x128xf32>
    %173 = arith.mulf %168, %172 : vector<16x128xf32>
    %174 = vector.broadcast %153 : vector<1x128xf32> to vector<16x128xf32>
    %175 = arith.mulf %173, %174 : vector<16x128xf32>
    %176 = vector.broadcast %155 : vector<1x128xf32> to vector<16x128xf32>
    %177 = arith.addf %175, %176 : vector<16x128xf32>
    %178 = arith.truncf %177 : vector<16x128xf32> to vector<16x128xbf16>
    %c0_80 = arith.constant 0 : index
    %c0_81 = arith.constant 0 : index
    %c0_82 = arith.constant 0 : index
    %179 = vector.load %arg14[%c0_80, %c0_81, %c0_82] : memref<1x128x512xbf16, #tpu.memory_space<vmem>>, vector<1x128x512xbf16>
    %180 = vector.shape_cast %179 : vector<1x128x512xbf16> to vector<128x512xbf16>
    %cst_83 = arith.constant dense<0.000000e+00> : vector<16x512xf32>
    %181 = tpu.matmul %178, %180, %cst_83 {dimension_numbers = #tpu.dot_dimension_numbers<[1], [0], [0], [1], [0, 0, 1, 1], [], []>} : vector<16x128xbf16>, vector<128x512xbf16>, vector<16x512xf32> -> vector<16x512xf32>
    %c0_84 = arith.constant 0 : index
    %c0_85 = arith.constant 0 : index
    %c0_86 = arith.constant 0 : index
    %182 = vector.load %arg15[%c0_84, %c0_85, %c0_86] : memref<1x1x512xf32, #tpu.memory_space<vmem>>, vector<1x1x512xf32>
    %183 = vector.shape_cast %182 : vector<1x1x512xf32> to vector<1x512xf32>
    %184 = vector.broadcast %183 : vector<1x512xf32> to vector<16x512xf32>
    %185 = arith.addf %181, %184 : vector<16x512xf32>
    %186 = arith.mulf %185, %185 : vector<16x512xf32>
    %187 = arith.mulf %185, %186 : vector<16x512xf32>
    %cst_87 = arith.constant 4.471500e-02 : f32
    %188 = vector.broadcast %cst_87 : f32 to vector<16x512xf32>
    %189 = arith.mulf %188, %187 : vector<16x512xf32>
    %190 = arith.addf %185, %189 : vector<16x512xf32>
    %cst_88 = arith.constant 0.797884583 : f32
    %191 = vector.broadcast %cst_88 : f32 to vector<16x512xf32>
    %192 = arith.mulf %191, %190 : vector<16x512xf32>
    %193 = math.tanh %192 : vector<16x512xf32>
    %cst_89 = arith.constant 1.000000e+00 : f32
    %194 = vector.broadcast %cst_89 : f32 to vector<16x512xf32>
    %195 = arith.addf %194, %193 : vector<16x512xf32>
    %cst_90 = arith.constant 5.000000e-01 : f32
    %196 = vector.broadcast %cst_90 : f32 to vector<16x512xf32>
    %197 = arith.mulf %196, %195 : vector<16x512xf32>
    %198 = arith.mulf %185, %197 : vector<16x512xf32>
    %199 = arith.truncf %198 : vector<16x512xf32> to vector<16x512xbf16>
    %c0_91 = arith.constant 0 : index
    %c0_92 = arith.constant 0 : index
    %c0_93 = arith.constant 0 : index
    %200 = vector.load %arg16[%c0_91, %c0_92, %c0_93] : memref<1x512x128xbf16, #tpu.memory_space<vmem>>, vector<1x512x128xbf16>
    %201 = vector.shape_cast %200 : vector<1x512x128xbf16> to vector<512x128xbf16>
    %cst_94 = arith.constant dense<0.000000e+00> : vector<16x128xf32>
    %202 = tpu.matmul %199, %201, %cst_94 {dimension_numbers = #tpu.dot_dimension_numbers<[1], [0], [0], [1], [0, 0, 1, 1], [], []>} : vector<16x512xbf16>, vector<512x128xbf16>, vector<16x128xf32> -> vector<16x128xf32>
    %c0_95 = arith.constant 0 : index
    %c0_96 = arith.constant 0 : index
    %c0_97 = arith.constant 0 : index
    %203 = vector.load %arg17[%c0_95, %c0_96, %c0_97] : memref<1x1x128xf32, #tpu.memory_space<vmem>>, vector<1x1x128xf32>
    %204 = vector.shape_cast %203 : vector<1x1x128xf32> to vector<1x128xf32>
    %205 = vector.broadcast %204 : vector<1x128xf32> to vector<16x128xf32>
    %206 = arith.addf %202, %205 : vector<16x128xf32>
    %c0_98 = arith.constant 0 : index
    %c0_99 = arith.constant 0 : index
    %c0_100 = arith.constant 0 : index
    %207 = vector.load %arg18[%c0_98, %c0_99, %c0_100] : memref<1x1x128xf32, #tpu.memory_space<vmem>>, vector<1x1x128xf32>
    %208 = vector.shape_cast %207 : vector<1x1x128xf32> to vector<1x128xf32>
    %209 = vector.broadcast %208 : vector<1x128xf32> to vector<16x128xf32>
    %210 = arith.mulf %209, %206 : vector<16x128xf32>
    %211 = arith.addf %151, %210 : vector<16x128xf32>
    %c0_101 = arith.constant 0 : index
    %c0_102 = arith.constant 0 : index
    %212 = vector.load %arg24[%c0_101, %c0_102] : memref<16x128xf32, #tpu.memory_space<vmem>>, vector<16x128xf32>
    tpu.vector_store %arg24[%c0_101, %c0_102], %211 {strides = array<i32>} : memref<16x128xf32, #tpu.memory_space<vmem>>, vector<16x128xf32>,
    %c1_i32 = arith.constant 1 : i32
    %213 = arith.cmpi eq, %arg0, %c1_i32 : i32
    %214 = arith.extui %213 : i1 to i32
    %c0_i32_103 = arith.constant 0 : i32
    %215 = arith.cmpi ne, %214, %c0_i32_103 : i32
    scf.if %215 {
      %216 = vector.shape_cast %211 : vector<16x128xf32> to vector<2x8x128xf32>
      %217 = vector.extract_strided_slice %216 {offsets = [0, 1, 0], sizes = [2, 4, 128], strides = [1, 1, 1]} : vector<2x8x128xf32> to vector<2x4x128xf32>
      %cst_104 = arith.constant dense<0.000000e+00> : vector<2x128xf32>
      %218 = vector.multi_reduction <add>, %217, %cst_104 [1] : vector<2x4x128xf32> to vector<2x128xf32>
      %cst_105 = arith.constant 4.000000e+00 : f32
      %219 = vector.broadcast %cst_105 : f32 to vector<2x128xf32>
      %220 = arith.divf %218, %219 : vector<2x128xf32>
      %c0_106 = arith.constant 0 : index
      %c0_107 = arith.constant 0 : index
      %221 = vector.load %arg19[%c0_106, %c0_107] : memref<1x128xf32, #tpu.memory_space<vmem>>, vector<1x128xf32>
      %c0_108 = arith.constant 0 : index
      %c0_109 = arith.constant 0 : index
      %222 = vector.load %arg20[%c0_108, %c0_109] : memref<1x128xf32, #tpu.memory_space<vmem>>, vector<1x128xf32>
      %cst_110 = arith.constant dense<0.000000e+00> : vector<2xf32>
      %223 = vector.multi_reduction <add>, %220, %cst_110 [1] : vector<2x128xf32> to vector<2xf32>
      %224 = vector.shape_cast %223 : vector<2xf32> to vector<2x1xf32>
      %cst_111 = arith.constant 1.280000e+02 : f32
      %225 = vector.broadcast %cst_111 : f32 to vector<2x1xf32>
      %226 = arith.divf %224, %225 : vector<2x1xf32>
      %227 = vector.broadcast %226 : vector<2x1xf32> to vector<2x128xf32>
      %228 = arith.subf %220, %227 : vector<2x128xf32>
      %229 = arith.mulf %228, %228 : vector<2x128xf32>
      %cst_112 = arith.constant dense<0.000000e+00> : vector<2xf32>
      %230 = vector.multi_reduction <add>, %229, %cst_112 [1] : vector<2x128xf32> to vector<2xf32>
      %231 = vector.shape_cast %230 : vector<2xf32> to vector<2x1xf32>
      %cst_113 = arith.constant 1.280000e+02 : f32
      %232 = vector.broadcast %cst_113 : f32 to vector<2x1xf32>
      %233 = arith.divf %231, %232 : vector<2x1xf32>
      %234 = vector.broadcast %226 : vector<2x1xf32> to vector<2x128xf32>
      %235 = arith.subf %220, %234 : vector<2x128xf32>
      %cst_114 = arith.constant 9.99999996E-13 : f32
      %236 = vector.broadcast %cst_114 : f32 to vector<2x1xf32>
      %237 = arith.addf %233, %236 : vector<2x1xf32>
      %238 = math.rsqrt %237 : vector<2x1xf32>
      %239 = vector.broadcast %238 : vector<2x1xf32> to vector<2x128xf32>
      %240 = arith.mulf %235, %239 : vector<2x128xf32>
      %241 = vector.broadcast %221 : vector<1x128xf32> to vector<2x128xf32>
      %242 = arith.mulf %240, %241 : vector<2x128xf32>
      %243 = vector.broadcast %222 : vector<1x128xf32> to vector<2x128xf32>
      %244 = arith.addf %242, %243 : vector<2x128xf32>
      %245 = arith.truncf %244 : vector<2x128xf32> to vector<2x128xbf16>
      %c0_115 = arith.constant 0 : index
      %c0_116 = arith.constant 0 : index
      %246 = vector.load %arg21[%c0_115, %c0_116] : memref<128x256xbf16, #tpu.memory_space<vmem>>, vector<128x256xbf16>
      %cst_117 = arith.constant dense<0.000000e+00> : vector<2x256xf32>
      %247 = tpu.matmul %245, %246, %cst_117 {dimension_numbers = #tpu.dot_dimension_numbers<[1], [0], [0], [1], [0, 0, 1, 1], [], []>} : vector<2x128xbf16>, vector<128x256xbf16>, vector<2x256xf32> -> vector<2x256xf32>
      %c0_118 = arith.constant 0 : index
      %c0_119 = arith.constant 0 : index
      %248 = vector.load %arg22[%c0_118, %c0_119] : memref<1x256xf32, #tpu.memory_space<vmem>>, vector<1x256xf32>
      %249 = vector.broadcast %248 : vector<1x256xf32> to vector<2x256xf32>
      %250 = arith.addf %247, %249 : vector<2x256xf32>
      %c0_120 = arith.constant 0 : index
      %c0_121 = arith.constant 0 : index
      %251 = vector.load %arg23[%c0_120, %c0_121] : memref<2x256xf32, #tpu.memory_space<vmem>>, vector<2x256xf32>
      tpu.vector_store %arg23[%c0_120, %c0_121], %250 {strides = array<i32>} : memref<2x256xf32, #tpu.memory_space<vmem>>, vector<2x256xf32>,
    } else {
    }
    return
  }
  func.func @transform_0(%arg0: i32) -> (i32, i32) {
    %c0_i32 = arith.constant 0 : i32
    %c0_i32_0 = arith.constant 0 : i32
    %c0_i32_1 = arith.constant 0 : i32
    return %c0_i32, %c0_i32_0 : i32, i32
  }
  func.func @transform_1(%arg0: i32) -> (i32, i32) {
    %c0_i32 = arith.constant 0 : i32
    %c0_i32_0 = arith.constant 0 : i32
    %c0_i32_1 = arith.constant 0 : i32
    return %c0_i32, %c0_i32_0 : i32, i32
  }
  func.func @transform_2(%arg0: i32) -> (i32, i32) {
    %c0_i32 = arith.constant 0 : i32
    %c0_i32_0 = arith.constant 0 : i32
    %c0_i32_1 = arith.constant 0 : i32
    return %c0_i32, %c0_i32_0 : i32, i32
  }
  func.func @transform_3(%arg0: i32) -> (i32, i32, i32) {
    %c0_i32 = arith.constant 0 : i32
    %c0_i32_0 = arith.constant 0 : i32
    %c0_i32_1 = arith.constant 0 : i32
    return %arg0, %c0_i32, %c0_i32_0 : i32, i32, i32
  }
  func.func @transform_4(%arg0: i32) -> (i32, i32, i32) {
    %c0_i32 = arith.constant 0 : i32
    %c0_i32_0 = arith.constant 0 : i32
    %c0_i32_1 = arith.constant 0 : i32
    return %arg0, %c0_i32, %c0_i32_0 : i32, i32, i32
  }
  func.func @transform_5(%arg0: i32) -> (i32, i32, i32) {
    %c0_i32 = arith.constant 0 : i32
    %c0_i32_0 = arith.constant 0 : i32
    %c0_i32_1 = arith.constant 0 : i32
    return %arg0, %c0_i32, %c0_i32_0 : i32, i32, i32
  }
  func.func @transform_6(%arg0: i32) -> (i32, i32, i32) {
    %c0_i32 = arith.constant 0 : i32
    %c0_i32_0 = arith.constant 0 : i32
    %c0_i32_1 = arith.constant 0 : i32
    return %arg0, %c0_i32, %c0_i32_0 : i32, i32, i32
  }
  func.func @transform_7(%arg0: i32) -> (i32, i32, i32, i32) {
    %c0_i32 = arith.constant 0 : i32
    %c0_i32_0 = arith.constant 0 : i32
    %c0_i32_1 = arith.constant 0 : i32
    %c0_i32_2 = arith.constant 0 : i32
    return %arg0, %c0_i32, %c0_i32_0, %c0_i32_1 : i32, i32, i32, i32
  }
  func.func @transform_8(%arg0: i32) -> (i32, i32, i32) {
    %c0_i32 = arith.constant 0 : i32
    %c0_i32_0 = arith.constant 0 : i32
    %c0_i32_1 = arith.constant 0 : i32
    return %arg0, %c0_i32, %c0_i32_0 : i32, i32, i32
  }
  func.func @transform_9(%arg0: i32) -> (i32, i32, i32) {
    %c0_i32 = arith.constant 0 : i32
    %c0_i32_0 = arith.constant 0 : i32
    %c0_i32_1 = arith.constant 0 : i32
    return %arg0, %c0_i32, %c0_i32_0 : i32, i32, i32
  }
  func.func @transform_10(%arg0: i32) -> (i32, i32, i32) {
    %c0_i32 = arith.constant 0 : i32
    %c0_i32_0 = arith.constant 0 : i32
    %c0_i32_1 = arith.constant 0 : i32
    return %arg0, %c0_i32, %c0_i32_0 : i32, i32, i32
  }
  func.func @transform_11(%arg0: i32) -> (i32, i32, i32) {
    %c0_i32 = arith.constant 0 : i32
    %c0_i32_0 = arith.constant 0 : i32
    %c0_i32_1 = arith.constant 0 : i32
    return %arg0, %c0_i32, %c0_i32_0 : i32, i32, i32
  }
  func.func @transform_12(%arg0: i32) -> (i32, i32, i32) {
    %c0_i32 = arith.constant 0 : i32
    %c0_i32_0 = arith.constant 0 : i32
    %c0_i32_1 = arith.constant 0 : i32
    return %arg0, %c0_i32, %c0_i32_0 : i32, i32, i32
  }
  func.func @transform_13(%arg0: i32) -> (i32, i32, i32) {
    %c0_i32 = arith.constant 0 : i32
    %c0_i32_0 = arith.constant 0 : i32
    %c0_i32_1 = arith.constant 0 : i32
    return %arg0, %c0_i32, %c0_i32_0 : i32, i32, i32
  }
  func.func @transform_14(%arg0: i32) -> (i32, i32, i32) {
    %c0_i32 = arith.constant 0 : i32
    %c0_i32_0 = arith.constant 0 : i32
    %c0_i32_1 = arith.constant 0 : i32
    return %arg0, %c0_i32, %c0_i32_0 : i32, i32, i32
  }
  func.func @transform_15(%arg0: i32) -> (i32, i32, i32) {
    %c0_i32 = arith.constant 0 : i32
    %c0_i32_0 = arith.constant 0 : i32
    %c0_i32_1 = arith.constant 0 : i32
    return %arg0, %c0_i32, %c0_i32_0 : i32, i32, i32
  }
  func.func @transform_16(%arg0: i32) -> (i32, i32, i32) {
    %c0_i32 = arith.constant 0 : i32
    %c0_i32_0 = arith.constant 0 : i32
    %c0_i32_1 = arith.constant 0 : i32
    return %arg0, %c0_i32, %c0_i32_0 : i32, i32, i32
  }
  func.func @transform_17(%arg0: i32) -> (i32, i32, i32) {
    %c0_i32 = arith.constant 0 : i32
    %c0_i32_0 = arith.constant 0 : i32
    %c0_i32_1 = arith.constant 0 : i32
    return %arg0, %c0_i32, %c0_i32_0 : i32, i32, i32
  }
  func.func @transform_18(%arg0: i32) -> (i32, i32) {
    %c0_i32 = arith.constant 0 : i32
    %c0_i32_0 = arith.constant 0 : i32
    %c0_i32_1 = arith.constant 0 : i32
    return %c0_i32, %c0_i32_0 : i32, i32
  }
  func.func @transform_19(%arg0: i32) -> (i32, i32) {
    %c0_i32 = arith.constant 0 : i32
    %c0_i32_0 = arith.constant 0 : i32
    %c0_i32_1 = arith.constant 0 : i32
    return %c0_i32, %c0_i32_0 : i32, i32
  }
  func.func @transform_20(%arg0: i32) -> (i32, i32) {
    %c0_i32 = arith.constant 0 : i32
    %c0_i32_0 = arith.constant 0 : i32
    %c0_i32_1 = arith.constant 0 : i32
    return %c0_i32, %c0_i32_0 : i32, i32
  }
  func.func @transform_21(%arg0: i32) -> (i32, i32) {
    %c0_i32 = arith.constant 0 : i32
    %c0_i32_0 = arith.constant 0 : i32
    %c0_i32_1 = arith.constant 0 : i32
    return %c0_i32, %c0_i32_0 : i32, i32
  }
  func.func @transform_22(%arg0: i32) -> (i32, i32) {
    %c0_i32 = arith.constant 0 : i32
    %c0_i32_0 = arith.constant 0 : i32
    %c0_i32_1 = arith.constant 0 : i32
    return %c0_i32, %c0_i32_0 : i32, i32
  }
}

</mosaic_0001>

<bundles_post_ra>
// kernel: only_vpt_forward.1
= control target key start
LH: loop header
LB: loop body
LE: loop exit
PB: predicated region body
PF: predicated region fallthrough
CT: control target
= control target key end

     0   :  { %s5539_s0 = inlined_call_operand.vmem [shape: bf16[16,768], index: 0, kind: input, shape index: {}]   ;;  %s5540_s1 = inlined_call_operand.vmem [shape: f32[16,128], index: 1, kind: input, shape index: {}]   ;;  %s5541_s2 = inlined_call_operand.vmem [shape: bf16[768,128], index: 2, kind: input, shape index: {}]   ;;  %s5542_s3 = inlined_call_operand.vmem [shape: f32[2,1,128], index: 3, kind: input, shape index: {}]   ;;  %s5543_s4 = inlined_call_operand.vmem [shape: f32[2,1,128], index: 4, kind: input, shape index: {}]   ;;  %s5544_s5 = inlined_call_operand.hbm [shape: bf16[2,128,384], index: 5, kind: input, shape index: {}]   ;;  %s5545_s6 = inlined_call_operand.vmem [shape: f32[2,1,384], index: 6, kind: input, shape index: {}]   ;;  %s5546_s7 = inlined_call_operand.vmem [shape: f32[2,4,16,16], index: 7, kind: input, shape index: {}]   ;;  %s5547_s8 = inlined_call_operand.vmem [shape: bf16[2,128,128], index: 8, kind: input, shape index: {}]   ;;  %s5548_s9 = inlined_call_operand.vmem [shape: f32[2,1,128], index: 9, kind: input, shape index: {}]   ;;  %s5549_s10 = inlined_call_operand.vmem [shape: f32[2,1,128], index: 10, kind: input, shape index: {}]   ;;  %s5550_s11 = inlined_call_operand.vmem [shape: f32[2,1,128], index: 11, kind: input, shape index: {}]   ;;  %s5551_s12 = inlined_call_operand.vmem [shape: f32[2,1,128], index: 12, kind: input, shape index: {}]   ;;  %s5552_s13 = inlined_call_operand.vmem [shape: bf16[2,128,512], index: 13, kind: input, shape index: {}]   ;;  %s5553_s14 = inlined_call_operand.vmem [shape: f32[2,1,512], index: 14, kind: input, shape index: {}]   ;;  %s5554_s15 = inlined_call_operand.vmem [shape: bf16[2,512,128], index: 15, kind: input, shape index: {}]   ;;  %s5555_s16 = inlined_call_operand.vmem [shape: f32[2,1,128], index: 16, kind: input, shape index: {}]   ;;  %s5556_s17 = inlined_call_operand.vmem [shape: f32[2,1,128], index: 17, kind: input, shape index: {}]   ;;  %s5557_s18 = inlined_call_operand.vmem [shape: f32[1,128], index: 18, kind: input, shape index: {}]   ;;  %s5558_s19 = inlined_call_operand.vmem [shape: f32[1,128], index: 19, kind: input, shape index: {}]   ;;  %s5559_s20 = inlined_call_operand.hbm [shape: bf16[128,256], index: 20, kind: input, shape index: {}]   ;;  %s5560_s21 = inlined_call_operand.hbm [shape: f32[1,256], index: 21, kind: input, shape index: {}]   ;;  %s5561_s22 = inlined_call_operand.hbm [shape: f32[2,256], index: 22, kind: output, shape index: {}]  }
   0x1   :  { %5575 = sst [smem:[#allocation19_spill]] %s5539_s0 }
   0x2   :  { %5576 = sst [smem:[#allocation20_spill]] %s5540_s1 }
   0x3   :  { %5577 = sst [smem:[#allocation21_spill]] %s5541_s2 }
   0x4   :  { %5578 = sst [smem:[#allocation22_spill]] %s5542_s3 }
   0x5   :  { %5579 = sst [smem:[#allocation23_spill]] %s5543_s4 }
   0x6   :  { %5580 = sst [smem:[#allocation24_spill]] %s5544_s5 }
   0x7   :  { %5581 = sst [smem:[#allocation25_spill]] %s5545_s6 }
   0x8   :  { %5582 = sst [smem:[#allocation26_spill]] %s5546_s7 }
   0x9   :  { %5583 = sst [smem:[#allocation27_spill]] %s5547_s8 }
   0xa   :  { %5584 = sst [smem:[#allocation28_spill]] %s5557_s18 }
   0xb   :  { %5585 = sst [smem:[#allocation29_spill]] %s5558_s19 }
   0xc   :  { %5586 = sst [smem:[#allocation30_spill]] %s5559_s20 }
   0xd   :  { %5587 = sst [smem:[#allocation31_spill]] %s5560_s21 }
   0xe   :  { %5588 = sst [smem:[#allocation32_spill]] %s5561_s22 }
   0xf   :  { %27 = vsyncpa [#allocation5], 0 }
  0x10   :  { %29 = vsyncpa [#allocation5 + $0x1], 0 }
  0x11   :  { %30 = vsyncpa [#allocation8], 0 }
  0x12   :  { %31 = vsyncpa [#allocation6], 0  ;;  %s4792_s3 = smov 0   ;;  %s4794_s28 = smov 0  }
  0x13   :  { %s4796_s29 = smov 0   ;;  %s4798_s30 = smov 0  }
  0x14 LB: > { %5589 = sst [smem:[#allocation14_spill]] %s4652_s28  ;;  %s4811_s4 = sadd.s32 4294967295, %s4660_s30   ;;  %s4660_s30 = sphi %s4798_s30, %s5626_s30   ;;  %s4656_s29 = sphi %s4796_s29, %s5629_s29   ;;  %s4652_s28 = sphi %s4794_s28, %s5628_s28   ;;  %s4648_s3 = sphi %s4792_s3, %s5627_s3  }
  0x15   : > { %5590 = sst [smem:[#allocation15_spill]] %s4656_s29  ;;  %p172_p0 = scmp.ne.s32.totalorder %s4652_s28, %s4648_s3 }
  0x16   : > { %p5566_p1 = scmp.eq.s32.totalorder %s4811_s4, 0  ;;  %p3721_p2 = scmp.ge.s32.totalorder %s4660_s30, 1 }
  0x17   : > { %p600_p3 = scmp.lt.s32.totalorder %s4660_s30, 3  ;;  %s4662_s1 = smov [#allocation7]  }
  0x18   : > { %p4820_p5 = por %p5566_p1, %p172_p0  ;;  %s627_s5 = sshll.u32 %s4662_s1, 4  ;;  %s628_s5 = int_to_ptr.vmem [resolvable:$true] %s627_s5 }
  0x19   : > { %p4824_p6 = pnand %p3721_p2, %p600_p3  ;;  %s4663_s6 = smov [#allocation9]  }
  0x1a   : > { %s5591_s0 = scalar_select %p4820_p5, 1, 0 }
  0x1b   : > { %s5592_s23 = scalar_select %p4824_p6, 1, 0 }
  0x1c   : > { %p4189_p7 = pneg %p4824_p6  ;;  %s641_s25 = sshll.u32 %s4663_s6, 4  ;;  %s642_s25 = int_to_ptr.vmem [resolvable:$true] %s641_s25 }
  0x1d   : > { %s4525_s26 = scalar_lea.vmem %s628_s5, 2048  ;;  %p4533_p13 = scmp.lt.s32.totalorder %s628_s5, %s628_s5 }
  0x1e   : > { %p4832_p8 = pnand %p4189_p7, %p5566_p1  ;;  %p4526_p10 = scmp.ne.s32.totalorder %s628_s5, %s4525_s26 }
  0x1f   : > { %p4534_p0 = scmp.lt.s32.totalorder %s4525_s26, %s4525_s26 }
  0x20   : > { %p4516_p9 = pneg %p4832_p8 }
  0x21   : > { %p4535_p2 = por %p4534_p0, %p4533_p13 }
  0x22   : > { %p4528_p11 = pnand %p4526_p10, %p4516_p9 }
  0x24   : > { %p4529_p12 = pneg %p4528_p11 }
  0x26   : > { %p4536_p3 = pnand %p4535_p2, %p4529_p12 }
  0x28   : > { %4539 = shalt.err (!%p4536_p3)
}
  0x29   : > { %s4664_s2 = smov 128   ;;  %s4665_s27 = smov 8  }
  0x2a   : > { %s5594_s20 = sld [smem:[#allocation30_spill]]  ;;  %s4551_s6 = scalar_lea.vmem %s642_s25, 32 }
  0x2b   : > { %p4552_p7 = scmp.ne.s32.totalorder %s642_s25, %s4551_s6  ;;  %p4559_p4 = scmp.lt.s32.totalorder %s642_s25, %s642_s25 }
  0x2c   : > { %p4560_p1 = scmp.lt.s32.totalorder %s4551_s6, %s4551_s6 }
  0x2d   : > { %p4554_p10 = pnand %p4552_p7, %p4516_p9 }
  0x2e   : > { %p4561_p13 = por %p4560_p1, %p4559_p4 }
  0x2f   : > { %p4555_p11 = pneg %p4554_p10 }
  0x30   : > { %4192 = dma.hbm_to_vmem [thread:$0]  (!%p4832_p8), %s5594_s20, 2048, %s628_s5, [#allocation8], %s4664_s2, %s4664_s2, %s4665_s27  }
  0x31   : > { %p4562_p12 = pnand %p4561_p13, %p4555_p11 }
  0x33   : > { %4565 = shalt.err (!%p4562_p12)
}
  0x34   : > { %s5595_s21 = sld [smem:[#allocation31_spill]]  ;;  %s4855_s5 = sadd.s32 1, %s4660_s30  }
  0x35   : > { %5596 = sst [smem:[#allocation16_spill]] %s4855_s5  ;;  %s159_s2 = sadd.s32 1, %s4656_s29 }
  0x36   : > { %s156_s27 = ssub.s32 %s4660_s30, %s4855_s5  ;;  %p166_p1 = scmp.ne.s32.totalorder %s4656_s29, %s4652_s28 }
  0x37   : > { %p157_p4 = scmp.eq.s32.totalorder %s156_s27, 0  ;;  %p167_p9 = scmp.eq.s32.totalorder %s4660_s30, 0 }
  0x38   : > { %p4202_p0 = scmp.lt.s32.totalorder %s4660_s30, 2  ;;  %s664_s22 = sand.u32 1, %s4656_s29  }
  0x39   : > { %s4866_s24 = scalar_select %p157_p4, %s4656_s29, %s159_s2  }
  0x3a   : > { %4195 = dma.hbm_to_vmem [thread:$0]  (!%p4832_p8), %s5595_s21, 32, %s642_s25, [#allocation8]  }
  0x3b   : > { %5597 = sst [smem:[#allocation17_spill]] %s4866_s24  ;;  %p168_p2 = por %p167_p9, %p166_p1 }
  0x3c   : > { %s4171_s3 = smul.u32 192, %s664_s22  ;;  %s5599_s20 = sld [smem:[#allocation24_spill]] }
  0x3d   : > { %s4172_s1 = smul.u32 3072, %s4660_s30  ;;  %p4869_p3 = pnand %p4202_p0, %p168_p2 }
  0x3e   : > { %s668_s27 = scalar_lea.vmem [#allocation4], %s4171_s3  ;;  %s4880_s2 = scalar_lea.sflag [#allocation5], %s664_s22 }
  0x3f   : > { %s675_s5 = sshll.u32 %s668_s27, 4  ;;  %p4568_p7 = pneg %p4869_p3  ;;  %s4878_s5 = int_to_ptr.vmem [resolvable:$true] %s675_s5 }
  0x42   : > { %s4876_s21 = scalar_lea.hbm %s5599_s20, %s4172_s1  ;;  %s4571_s1 = scalar_lea.hbm %s5599_s20, 6144 }
  0x43   : > { %s4566_s30 = scalar_lea.hbm %s4876_s21, 3072  ;;  %p4572_p13 = scmp.lt.s32.totalorder %s4876_s21, %s5599_s20 }
  0x44   : > { %p4567_p8 = scmp.ne.s32.totalorder %s4876_s21, %s4566_s30  ;;  %p4573_p12 = scmp.lt.s32.totalorder %s4571_s1, %s4566_s30 }
  0x46   : > { %p4569_p10 = pnand %p4568_p7, %p4567_p8  ;;  %p4574_p1 = por %p4573_p12, %p4572_p13 }
  0x48   : > { %p4570_p11 = pneg %p4569_p10 }
  0x4a   : > { %p4575_p4 = pnand %p4574_p1, %p4570_p11 }
  0x4c   : > { %4578 = shalt.err (!%p4575_p4)
}
  0x4d   : > { %s4579_s22 = scalar_lea.vmem %s4878_s5, 3072  ;;  %s4666_s3 = smov [#allocation4]  }
  0x4e   : > { %p4580_p9 = scmp.ne.s32.totalorder %s4878_s5, %s4579_s22  ;;  %s4584_s27 = sshll.u32 %s4666_s3, 4  ;;  %s4585_s27 = int_to_ptr.vmem [resolvable:$false] %s4584_s27 }
  0x4f   : > { %s4586_s24 = scalar_lea.vmem %s4585_s27, 6144  ;;  %p4587_p8 = scmp.lt.s32.totalorder %s4878_s5, %s4585_s27 }
  0x50   : > { %p4582_p0 = pnand %p4580_p9, %p4568_p7  ;;  %p4588_p10 = scmp.lt.s32.totalorder %s4586_s24, %s4579_s22 }
  0x52   : > { %p4583_p2 = pneg %p4582_p0  ;;  %p4589_p5 = por %p4588_p10, %p4587_p8 }
  0x54   : > { %p4590_p6 = pnand %p4589_p5, %p4583_p2 }
  0x56   : > { %4593 = shalt.err (!%p4590_p6)
}
  0x57   : > { %s4667_s29 = smov 192   ;;  %s4668_s30 = smov 12  }
  0x58   : > { %4199 = dma.hbm_to_vmem [thread:$0]  (!%p4869_p3), %s4876_s21, 3072, %s4878_s5, %s4880_s2, %s4667_s29, %s4667_s29, %s4668_s30  }
  0x59   : > { %p5600_p7 = scmp.ne.s32.totalorder %s5592_s23, 0 }
  0x5b   : > { %769 = sbr.rel (%p5600_p7) target bundleno = 3824 (0xef0), region = 108 }
  0x60   : > { %s771_s25 = sand.u32 1, %s4652_s28   ;;  %p5601_p5 = scmp.ne.s32.totalorder %s5591_s0, 0 }
  0x61   : > { %s4173_s1 = smul.u32 192, %s771_s25  ;;  %s772_s26 = scalar_lea.sflag [#allocation5], %s771_s25 }
  0x63   : > { %s4904_s22 = scalar_lea.vmem [#allocation4], %s4173_s1 }
  0x64   : > { %4635 = dma.done.wait (%p5601_p5), %s772_s26, 3072  }
  0x65   : > { %4637 = vsyncadd (%p5601_p5), %s772_s26, 4294964224  ;;  %p5602_p6 = scmp.eq.s32.totalorder %s4811_s4, 0 }
  0x67   : > { %4639 = dma.done.wait (%p5602_p6), [#allocation8], 2080   ;;  %p5603_p3 = pmov %p5602_p6 }
  0x68   : > { %p891_p11 = scmp.lt.s32.totalorder %s4811_s4, 1  ;;  %s5606_s7 = sld [smem:[#allocation26_spill]] }
  0x69   : > { %4641 = vsyncadd (%p5603_p3), [#allocation8], 4294965216  ;;  %s5608_s8 = sld [smem:[#allocation27_spill]]  ;;  %p5610_p13 = scmp.ne.s32.totalorder %s4811_s4, 0 }
  0x6a   : > { %s4916_s21 = scalar_select %p891_p11, %s4811_s4, 1 }
  0x6b   : > { %s5609_s0 = sld [smem:[#allocation25_spill]] }
  0x6c   : > { %s4174_s29 = smul.u32 3, %s4916_s21  ;;  %s3935_s30 = sshll.u32 %s4916_s21, 6 }
  0x6d   : > { %s3735_s6 = sshll.u32 %s4916_s21, 2  ;;  %s942_s28 = scalar_lea.vmem %s5556_s17, %s4916_s21 }
  0x6e   : > { %s4931_s26 = scalar_lea.vmem %s5606_s7, %s3935_s30  ;;  %s4969_s18 = scalar_lea.vmem %s5553_s14, %s3735_s6 }
  0x6f   : > { %5607 = sst [smem:[#allocation18_spill]] %s4931_s26  ;;  %s4936_s20 = scalar_lea.vmem %s5608_s8, %s3935_s30 }
  0x70   : > { %s3937_s8 = sshll.u32 %s4916_s21, 8  ;;  %s939_s30 = scalar_lea.vmem %s5555_s16, %s4916_s21 }
  0x71   : > { %s4941_s19 = scalar_lea.vmem %s5609_s0, %s4174_s29  ;;  %s4963_s29 = scalar_lea.vmem %s5552_s13, %s3937_s8 }
  0x72   : > { %s4974_s7 = scalar_lea.vmem %s5554_s15, %s3937_s8  ;;  %947 = sbr.rel (%p5610_p13) target bundleno = 390 (0x186), region = 124 }
  0x73   : > { %s5611_s6 = sld [smem:[#allocation21_spill]] (!%p5610_p13) }
  0x74   : > { %s5612_s1 = sld [smem:[#allocation19_spill]] (!%p5610_p13) }
  0x75   : > { %s5613_s25 = sld [smem:[#allocation20_spill]] (!%p5610_p13) }
  0x79   : > { %v4253_v0 = vld [vmem:[%s5611_s6 + $0x78] sm:$0xff]   ;;  %v4257_v4 = vld [vmem:[%s5611_s6 + $0x70] sm:$0xff]   ;;  %v4261_v8 = vld [vmem:[%s5611_s6 + $0x68] sm:$0xff]  }
  0x7a   : > { %v4254_v1 = vld [vmem:[%s5611_s6 + $0x38] sm:$0xff]   ;;  %3939 = vmatprep.subr.bf16.mxu0 %v4253_v0  ;;  %v4258_v5 = vld [vmem:[%s5611_s6 + $0x30] sm:$0xff]   ;;  %v4262_v9 = vld [vmem:[%s5611_s6 + $0x28] sm:$0xff]  }
  0x7b   : > { %v4255_v2 = vld [vmem:[%s5611_s6 + $0xf8] sm:$0xff]   ;;  %3940 = vmatpush3.bf16.msra.mxu0 %v4254_v1  ;;  %v4259_v6 = vld [vmem:[%s5611_s6 + $0xf0] sm:$0xff]   ;;  %v4263_v10 = vld [vmem:[%s5611_s6 + $0xe8] sm:$0xff]  }
  0x7c   : > { %v4256_v3 = vld [vmem:[%s5611_s6 + $0xb8] sm:$0xff]   ;;  %3961 = vmatprep.subr.bf16.mxu1 %v4255_v2  ;;  %3941 = vmatprep.subr.bf16.mxu0 %v4257_v4  ;;  %v4260_v7 = vld [vmem:[%s5611_s6 + $0xb0] sm:$0xff]   ;;  %v4264_v11 = vld [vmem:[%s5611_s6 + $0xa8] sm:$0xff]  }
  0x7d   : > { %3962 = vmatpush3.bf16.msra.mxu1 %v4256_v3  ;;  %v4265_v12 = vld [vmem:[%s5611_s6 + $0x60] sm:$0xff]   ;;  %v4269_v16 = vld [vmem:[%s5611_s6 + $0x58] sm:$0xff]   ;;  %v4273_v20 = vld [vmem:[%s5611_s6 + $0x50] sm:$0xff]  }
  0x7e   : > { %3963 = vmatprep.subr.bf16.mxu1 %v4259_v6  ;;  %v4266_v13 = vld [vmem:[%s5611_s6 + $0x20] sm:$0xff]   ;;  %v4270_v17 = vld [vmem:[%s5611_s6 + $0x18] sm:$0xff]   ;;  %v4274_v21 = vld [vmem:[%s5611_s6 + $0x10] sm:$0xff]  }
  0x7f   : > { %3942 = vmatpush3.bf16.msra.mxu0 %v4258_v5  ;;  %v4267_v14 = vld [vmem:[%s5611_s6 + $0xe0] sm:$0xff]   ;;  %v4271_v18 = vld [vmem:[%s5611_s6 + $0xd8] sm:$0xff]   ;;  %v4275_v22 = vld [vmem:[%s5611_s6 + $0xd0] sm:$0xff]  }
  0x80   : > { %3943 = vmatprep.subr.bf16.mxu0 %v4261_v8  ;;  %v4268_v15 = vld [vmem:[%s5611_s6 + $0xa0] sm:$0xff]   ;;  %v4272_v19 = vld [vmem:[%s5611_s6 + $0x98] sm:$0xff]   ;;  %v4276_v23 = vld [vmem:[%s5611_s6 + $0x90] sm:$0xff]  }
  0x81   : > { %3964 = vmatpush3.bf16.msra.mxu1 %v4260_v7  ;;  %v4277_v24 = vld [vmem:[%s5611_s6 + $0x48] sm:$0xff]   ;;  %v4281_v28 = vld [vmem:[%s5611_s6 + $0x40] sm:$0xff]   ;;  %v4288_v34 = vld [vmem:[%s5611_s6 + $0x178] sm:$0xff]  }
  0x82   : > { %3965 = vmatprep.subr.bf16.mxu1 %v4263_v10  ;;  %v4278_v25 = vld [vmem:[%s5611_s6 + $0x8] sm:$0xff]   ;;  %v4282_v29 = vld [vmem:[%s5611_s6] sm:$0xff]   ;;  %v4292_v37 = vld [vmem:[%s5611_s6 + $0x138] sm:$0xff]  }
  0x83   : > { %3944 = vmatpush3.bf16.msra.mxu0 %v4262_v9  ;;  %v4279_v26 = vld [vmem:[%s5611_s6 + $0xc8] sm:$0xff]   ;;  %v4283_v30 = vld [vmem:[%s5611_s6 + $0xc0] sm:$0xff]   ;;  %v4293_v38 = vld [vmem:[%s5611_s6 + $0x170] sm:$0xff]  }
  0x84   : > { %3945 = vmatprep.subr.bf16.mxu0 %v4265_v12  ;;  %v4280_v27 = vld [vmem:[%s5611_s6 + $0x88] sm:$0xff]   ;;  %v4284_v31 = vld [vmem:[%s5612_s1] ss:$24 sps:$4 sm:$0xff]   ;;  %v4286_v32 = vld [vmem:[%s5612_s1 + $0x4] ss:$24 sps:$4 sm:$0xff]  }
  0x85   : > { %3966 = vmatpush3.bf16.msra.mxu1 %v4264_v11  ;;  %v4287_v33 = vld [vmem:[%s5611_s6 + $0x80] sm:$0xff]   ;;  %1402 = vmatprep.mubr.bf16.mxu0 %v4286_v32  ;;  %v4294_v39 = vld [vmem:[%s5611_s6 + $0x130] sm:$0xff]   ;;  %v4295_v40 = vld [vmem:[%s5611_s6 + $0x168] sm:$0xff]  }
  0x86   : > { %3967 = vmatprep.subr.bf16.mxu1 %v4267_v14  ;;  %v4289_v35 = vld [vmem:[%s5612_s1 + $0x8] ss:$24 sps:$4 sm:$0xff]   ;;  %v4291_v36 = vld [vmem:[%s5612_s1 + $0xc] ss:$24 sps:$4 sm:$0xff]   ;;  %v4299_v44 = vld [vmem:[%s5611_s6 + $0x158] sm:$0xff]  }
  0x87   : > { %3946 = vmatpush3.bf16.msra.mxu0 %v4266_v13  ;;  %1443 = vmatprep.mubr.bf16.mxu1 %v4291_v36  ;;  %v4296_v41 = vld [vmem:[%s5611_s6 + $0x128] sm:$0xff]   ;;  %v4297_v42 = vld [vmem:[%s5611_s6 + $0x160] sm:$0xff]   ;;  %v4300_v45 = vld [vmem:[%s5611_s6 + $0x118] sm:$0xff]  }
  0x88   : > { %3947 = vmatprep.subr.bf16.mxu0 %v4269_v16  ;;  %v4298_v43 = vld [vmem:[%s5611_s6 + $0x120] sm:$0xff]   ;;  %v4301_v46 = vld [vmem:[%s5611_s6 + $0x150] sm:$0xff]   ;;  %v4303_v49 = vld [vmem:[%s5611_s6 + $0x148] sm:$0xff]  }
  0x89   : > { %3968 = vmatpush3.bf16.msra.mxu1 %v4268_v15  ;;  %v4309_v47 = vld [vmem:[%s5612_s1 + $0x14] ss:$24 sps:$4 sm:$0xff]   ;;  %v4305_v51 = vld [vmem:[%s5611_s6 + $0x140] sm:$0xff]   ;;  %v4307_v53 = vld [vmem:[%s5612_s1 + $0x10] ss:$24 sps:$4 sm:$0xff]  }
  0x8a   : > { %3969 = vmatprep.subr.bf16.mxu1 %v4271_v18  ;;  %v4302_v48 = vld [vmem:[%s5611_s6 + $0x110] sm:$0xff]   ;;  %v4304_v50 = vld [vmem:[%s5611_s6 + $0x108] sm:$0xff]   ;;  %v4306_v52 = vld [vmem:[%s5611_s6 + $0x100] sm:$0xff]  }
  0x8b   : > { %3948 = vmatpush3.bf16.msra.mxu0 %v4270_v17  ;;  %v1050_v60 = vld [vmem:[%s5613_s25] sm:$0xff]  ;;  %v1051_v2 = vld [vmem:[%s5613_s25 + $0x8] sm:$0xff] }
  0x8c   : > { %3949 = vmatprep.subr.bf16.mxu0 %v4273_v20 }
  0x8d   : > { %3970 = vmatpush3.bf16.msra.mxu1 %v4272_v19 }
  0x8e   : > { %3971 = vmatprep.subr.bf16.mxu1 %v4275_v22 }
  0x8f   : > { %3950 = vmatpush3.bf16.msra.mxu0 %v4274_v21 }
  0x90   : > { %3951 = vmatprep.subr.bf16.mxu0 %v4277_v24 }
  0x91   : > { %3972 = vmatpush3.bf16.msra.mxu1 %v4276_v23 }
  0x92   : > { %3973 = vmatprep.subr.bf16.mxu1 %v4279_v26 }
  0x93   : > { %3952 = vmatpush3.bf16.msra.mxu0 %v4278_v25 }
  0x94   : > { %3953 = vmatprep.subr.bf16.mxu0 %v4281_v28 }
  0x95   : > { %3974 = vmatpush3.bf16.msra.mxu1 %v4280_v27 }
  0x96   : > { %3975 = vmatprep.subr.bf16.mxu1 %v4283_v30 }
  0x97   : > { %3954 = vmatpush3.bf16.msra.mxu0 %v4282_v29 }
  0x98   : > { %3983 = vmatprep.subr.bf16.mxu0 %v4288_v34 }
  0x99   : > { %3976 = vmatpush3.bf16.msra.mxu1 %v4287_v33 }
  0x9a   : > { %1403 = vmatmul.mubr.bf16.vlgmr.msra.gmra.mxu0 %v4284_v31 }
  0x9b   : > { %3984 = vmatpush3.bf16.msra.mxu0 %v4292_v37  ;;  %1484 = vmatprep.mubr.bf16.mxu0 %v4309_v47 }
  0x9c   : > { %1444 = vmatmul.mubr.bf16.vlgmr.msra.gmra.mxu1 %v4289_v35  ;;  %3985 = vmatprep.subr.bf16.mxu0 %v4293_v38 }
  0x9f   : > { %3986 = vmatpush3.bf16.msra.mxu0 %v4294_v39 }
  0xa0   : > { %3987 = vmatprep.subr.bf16.mxu0 %v4295_v40 }
  0xa3   : > { %3988 = vmatpush3.bf16.msra.mxu0 %v4296_v41 }
  0xa4   : > { %3989 = vmatprep.subr.bf16.mxu0 %v4297_v42 }
  0xa7   : > { %3990 = vmatpush3.bf16.msra.mxu0 %v4298_v43 }
  0xa8   : > { %3991 = vmatprep.subr.bf16.mxu0 %v4299_v44 }
  0xab   : > { %3992 = vmatpush3.bf16.msra.mxu0 %v4300_v45 }
  0xac   : > { %3993 = vmatprep.subr.bf16.mxu0 %v4301_v46 }
  0xaf   : > { %3994 = vmatpush3.bf16.msra.mxu0 %v4302_v48 }
  0xb0   : > { %3995 = vmatprep.subr.bf16.mxu0 %v4303_v49 }
  0xb3   : > { %3996 = vmatpush3.bf16.msra.mxu0 %v4304_v50 }
  0xb4   : > { %3997 = vmatprep.subr.bf16.mxu0 %v4305_v51 }
  0xb7   : > { %3998 = vmatpush3.bf16.msra.mxu0 %v4306_v52 }
  0xba   : > { %1485 = vmatmul.mubr.bf16.vlgmr.msra.gmra.mxu0 %v4307_v53 }
 0x15a   : > { %v3955_v54 = vpop.f32.mrf.mxu0 }
 0x15c   : > { %v3956_v55 = vpop.f32.mrf.mxu0  ;;  %v3977_v56 = vpop.f32.mrf.mxu1 }
 0x15d   : > { %v3957_v59 = vadd.f32 %v3956_v55, %v3955_v54 }
 0x15e   : > { %v3958_v57 = vpop.f32.mrf.mxu0  ;;  %v3978_v58 = vpop.f32.mrf.mxu1 }
 0x15f   : > { %v1405_v63 = vadd.f32 %v3957_v59, %v1050_v60  ;;  %v3979_v0 = vadd.f32 %v3978_v58, %v3977_v56 }
 0x160   : > { %v3959_v61 = vpop.f32.mrf.mxu0  ;;  %v3980_v62 = vpop.f32.mrf.mxu1 }
 0x161   : > { %v3960_v1 = vadd.f32 %v3959_v61, %v3958_v57  ;;  %v1446_v6 = vadd.f32 %v3979_v0, %v1405_v63 }
 0x162   : > { %v3981_v3 = vpop.f32.mrf.mxu1 }
 0x163   : > { %v1408_v7 = vadd.f32 %v3960_v1, %v1051_v2  ;;  %v3982_v8 = vadd.f32 %v3981_v3, %v3980_v62 }
 0x165   : > { %v1449_v13 = vadd.f32 %v3982_v8, %v1408_v7 }
 0x17a   : > { %v3999_v4 = vpop.f32.mrf.mxu0 }
 0x17c   : > { %v4000_v5 = vpop.f32.mrf.mxu0 }
 0x17d   : > { %v4001_v9 = vadd.f32 %v4000_v5, %v3999_v4 }
 0x17e   : > { %v4002_v10 = vpop.f32.mrf.mxu0 }
 0x17f   : > { %v1487_v11 = vadd.f32 %v4001_v9, %v1446_v6 }
 0x180   : > { %v4003_v12 = vpop.f32.mrf.mxu0 }
 0x181   : > { %1493 = vst [vmem:[#allocation2] sm:$0xff] %v1487_v11  ;;  %v4004_v14 = vadd.f32 %v4003_v12, %v4002_v10 }
 0x183   : > { %v1490_v15 = vadd.f32 %v4004_v14, %v1449_v13 }
 0x185   : > { %1494 = vst [vmem:[#allocation2 + $0x8] sm:$0xff] %v1490_v15 }
 0x186 PF: > { %v4310_v18 = vld [vmem:[%s4904_s22 + $0xac] ss:$12 sps:$4 sm:$0xff]   ;;  %v4312_v19 = vld [vmem:[%s4904_s22 + $0xa8] ss:$12 sps:$4 sm:$0xff]   ;;  %v4669_v20 = vmov 0.0   ;;  %v4670_v43 = vmov 0   ;;  %v1573_v5 = vlaneseq  ;;  %s5620_s2 = scalar_lea.vmem %s5549_s10, %s4916_s21 }
 0x187   : > { %4083 = vmatprep.subr.bf16.mxu1 %v4669_v20  ;;  %v4313_v21 = vld [vmem:[%s4904_s22 + $0xb0] ss:$12 sps:$4 sm:$0xff]   ;;  %1716 = vmatprep.subr.bf16.mxu0 %v4310_v18  ;;  %v4314_v30 = vld [vmem:[%s4904_s22 + $0x94] ss:$12 sps:$4 sm:$0xff]   ;;  %v4317_v32 = vld [vmem:[%s4904_s22 + $0x98] ss:$12 sps:$4 sm:$0xff]  }
 0x188   : > { %v1495_v16 = vld [vmem:[#allocation2] sm:$0xff]  ;;  %1717 = vmatpush1.bf16.msra.mxu0 %v4312_v19  ;;  %4084 = vmatpush3.bf16.msra.mxu1 %v4313_v21  ;;  %v4316_v31 = vld [vmem:[%s4904_s22 + $0x90] ss:$12 sps:$4 sm:$0xff]   ;;  %v4325_v38 = vld [vmem:[%s4904_s22 + $0x68] ss:$12 sps:$4 sm:$0xff]   ;;  %vm4671_vm0 = vmmov 0  }
 0x189   : > { %1499 = vadd.xlane.f32.xlu0 %v1495_v16  ;;  %4085 = vmatprep.subr.bf16.mxu1 %v4669_v20  ;;  %v4318_v33 = vld [vmem:[%s4904_s22 + $0x7c] ss:$12 sps:$4 sm:$0xff]   ;;  %v4320_v34 = vld [vmem:[%s4904_s22 + $0x78] ss:$12 sps:$4 sm:$0xff]   ;;  %v4321_v35 = vld [vmem:[%s4904_s22 + $0x80] ss:$12 sps:$4 sm:$0xff]  }
 0x18a   : > { %1718 = vmatprep.subr.bf16.mxu0 %v4314_v30  ;;  %v4322_v36 = vld [vmem:[%s4904_s22 + $0x64] ss:$12 sps:$4 sm:$0xff]   ;;  %v4324_v37 = vld [vmem:[%s4904_s22 + $0x60] ss:$12 sps:$4 sm:$0xff]   ;;  %v4328_v40 = vld [vmem:[%s4904_s22 + $0x48] ss:$12 sps:$4 sm:$0xff]   ;;  %1748 = vmatprep.mubr.bf16.mxu0 %v4670_v43 }
 0x18b   : > { %v4326_v39 = vld [vmem:[%s4904_s22 + $0x4c] ss:$12 sps:$4 sm:$0xff]   ;;  %v4329_v41 = vld [vmem:[%s4904_s22 + $0x50] ss:$12 sps:$4 sm:$0xff]   ;;  %v4330_v42 = vld [vmem:[%s4904_s22 + $0x34] ss:$12 sps:$4 sm:$0xff]   ;;  %4099 = vmatprep.mubr.msk.bf16.mxu1 %vm4671_vm0, %v4669_v20 }
 0x18c   : > { %v1496_v17 = vld [vmem:[#allocation2 + $0x8] sm:$0xff]  ;;  %1719 = vmatpush1.bf16.msra.mxu0 %v4316_v31  ;;  %4086 = vmatpush3.bf16.msra.mxu1 %v4317_v32  ;;  %v4332_v44 = vld [vmem:[%s4904_s22 + $0x30] ss:$12 sps:$4 sm:$0xff]   ;;  %v4333_v45 = vld [vmem:[%s4904_s22 + $0x38] ss:$12 sps:$4 sm:$0xff]   ;;  %s5614_s23 = sld [smem:[#allocation22_spill]] }
 0x18d   : > { %1501 = vadd.xlane.f32.xlu0 %v1496_v17  ;;  %4087 = vmatprep.subr.bf16.mxu1 %v4669_v20  ;;  %v4334_v46 = vld [vmem:[%s4904_s22 + $0x1c] ss:$12 sps:$4 sm:$0xff]   ;;  %v4336_v47 = vld [vmem:[%s4904_s22 + $0x18] ss:$12 sps:$4 sm:$0xff]   ;;  %v4337_v48 = vld [vmem:[%s4904_s22 + $0x20] ss:$12 sps:$4 sm:$0xff]  }
 0x18e   : > { %1720 = vmatprep.subr.bf16.mxu0 %v4318_v33  ;;  %v4338_v49 = vld [vmem:[%s4904_s22 + $0x4] ss:$12 sps:$4 sm:$0xff]   ;;  %v4340_v50 = vld [vmem:[%s4904_s22] ss:$12 sps:$4 sm:$0xff]   ;;  %v4341_v51 = vld [vmem:[%s4904_s22 + $0x8] ss:$12 sps:$4 sm:$0xff]  }
 0x18f   : > { %s5616_s3 = sld [smem:[#allocation23_spill]]  ;;  %v5215_v6 = vshrl.u32 %v1573_v5, 7  ;;  %v1571_v10 = vld [vmem:[%s4941_s19] sm:$0x7]  ;;  %vm1803_vm1 = vcmask 261120   ;;  %vm1857_vm2 = vcmask 130048  }
 0x190   : > { %1721 = vmatpush1.bf16.msra.mxu0 %v4320_v34  ;;  %4088 = vmatpush3.bf16.msra.mxu1 %v4321_v35  ;;  %s5618_s19 = sld [smem:[#allocation18_spill]]  ;;  %s4672_s24 = smov 96   ;;  %vm2066_vm3 = vcmask 523520   ;;  %vm2205_vm4 = vcmask 785920   ;;  %vm2344_vm5 = vcmask 1048320  }
 0x191   : > { %4089 = vmatprep.subr.bf16.mxu1 %v4669_v20  ;;  %1722 = vmatprep.subr.bf16.mxu0 %v4322_v36  ;;  %v5218_v7 = vsub.s32 1, %v5215_v6  ;;  %v5223_v18 = vsub.s32 0, %v5215_v6  ;;  %s4673_s26 = smov 64   ;;  %s4674_s22 = smov 32  }
 0x192   : > { %s5615_s0 = scalar_lea.vmem %s5614_s23, %s4916_s21  ;;  %s5619_s23 = scalar_lea.vmem %s5548_s9, %s4916_s21 }
 0x193   : > { %v3793_v60 = vld [vmem:[%s5615_s0] ss:$0 sm:$0xff]  ;;  %v1580_v13 = vrot.slane %v1571_v10, %v5218_v7  ;;  %p3911_p12 = scmp.ne.s32.totalorder %s4811_s4, 1 }
 0x194   : > { %1723 = vmatpush1.bf16.msra.mxu0 %v4324_v37  ;;  %4090 = vmatpush3.bf16.msra.mxu1 %v4325_v38  ;;  %s5624_s0 = sld [smem:[#allocation29_spill]] (!%p3911_p12) }
 0x195   : > { %1724 = vmatprep.subr.bf16.mxu0 %v4326_v39  ;;  %4091 = vmatprep.subr.bf16.mxu1 %v4669_v20  ;;  %s5617_s8 = scalar_lea.vmem %s5616_s3, %s4916_s21 }
 0x196   : > { %v3794_v0 = vld [vmem:[%s5617_s8] ss:$0 sm:$0xff]  ;;  %v1854_v39 = vld [vmem:[%s5618_s19 + $0x8] sm:$0xff]  ;;  %s5621_s8 = scalar_lea.vmem %s5550_s11, %s4916_s21 }
 0x197   : > { %v1853_v34 = vld [vmem:[%s5618_s19] sm:$0xff] }
 0x198   : > { %1725 = vmatpush1.bf16.msra.mxu0 %v4328_v40  ;;  %4092 = vmatpush3.bf16.msra.mxu1 %v4329_v41 }
 0x199   : > { %1726 = vmatprep.subr.bf16.mxu0 %v4330_v42  ;;  %4093 = vmatprep.subr.bf16.mxu1 %v4669_v20 }
 0x19c   : > { %1727 = vmatpush1.bf16.msra.mxu0 %v4332_v44  ;;  %4094 = vmatpush3.bf16.msra.mxu1 %v4333_v45 }
 0x19d   : > { %1728 = vmatprep.subr.bf16.mxu0 %v4334_v46  ;;  %4095 = vmatprep.subr.bf16.mxu1 %v4669_v20 }
 0x1a0   : > { %1729 = vmatpush1.bf16.msra.mxu0 %v4336_v47  ;;  %4096 = vmatpush3.bf16.msra.mxu1 %v4337_v48 }
 0x1a1   : > { %1730 = vmatprep.subr.bf16.mxu0 %v4338_v49  ;;  %4097 = vmatprep.subr.bf16.mxu1 %v4669_v20 }
 0x1a4   : > { %1731 = vmatpush1.bf16.msra.mxu0 %v4340_v50  ;;  %4098 = vmatpush3.bf16.msra.mxu1 %v4341_v51 }
 0x1a5   : > { %4103 = vmatprep.subr.bf16.mxu1 %v4669_v20  ;;  %4127 = vmatprep.subr.bf16.mxu0 %v4669_v20 }
 0x212   : > { %v1500_v22 = vpop.xlane.xlu0 %1499 }
 0x213   : > { %v1504_v23 = vmul.f32 0.0078125, %v1500_v22  ;;  %v1583_v22 = vsub.s32 2, %v5215_v6 }
 0x215   : > { %v5159_v24 = vsub.f32 %v1495_v16, %v1504_v23 }
 0x216   : > { %v1502_v25 = vpop.xlane.xlu0 %1501 }
 0x217   : > { %v1505_v26 = vmul.f32 0.0078125, %v1502_v25  ;;  %v1508_v27 = vmul.f32 %v5159_v24, %v5159_v24 }
 0x219   : > { %v5163_v28 = vsub.f32 %v1496_v17, %v1505_v26  ;;  %1510 = vadd.xlane.f32.xlu1 %v1508_v27  ;;  %v1584_v26 = vrot.slane %v1571_v10, %v1583_v22 }
 0x21b   : > { %v1509_v29 = vmul.f32 %v5163_v28, %v5163_v28 }
 0x21d   : > { %1512 = vadd.xlane.f32.xlu1 %v1509_v29 }
 0x2a2   : > { %v1511_v52 = vpop.xlane.xlu1 %1510 }
 0x2a3   : > { %v1514_v53 = vmul.f32 0.0078125, %v1511_v52 }
 0x2a5   : > { %v1516_v54 = vadd.f32 1e-12, %v1514_v53 }
 0x2a6   : > { %v1513_v55 = vpop.xlane.xlu1 %1512 }
 0x2a7   : > { %4430 = vrsqrt.f32 %v1516_v54  ;;  %v1515_v56 = vmul.f32 0.0078125, %v1513_v55 }
 0x2a9   : > { %v1517_v57 = vadd.f32 1e-12, %v1515_v56 }
 0x2ab   : > { %4432 = vrsqrt.f32 %v1517_v57 }
 0x2b4   : > { %v4431_v58 = vpop.eup %4430 }
 0x2b5   : > { %v1520_v59 = vmul.f32 %v4431_v58, %v5159_v24  ;;  %v1576_v24 = vrot.slane %v1571_v10, %v5223_v18 }
 0x2b7   : > { %v1528_v63 = vmul.f32 %v3793_v60, %v1520_v59 }
 0x2b8   : > { %v4433_v61 = vpop.eup %4432 }
 0x2b9   : > { %v1521_v62 = vmul.f32 %v4433_v61, %v5163_v28  ;;  %v1536_v2 = vadd.f32 %v3794_v0, %v1528_v63 }
 0x2bb   : > { %v1529_v1 = vmul.f32 %v3793_v60, %v1521_v62 }
 0x2bd   : > { %v1537_v3 = vadd.f32 %v3794_v0, %v1529_v1 }
 0x2bf   : > { %v1538_v4 = vpack.c.bf16 %v1537_v3, %v1536_v2 }
 0x2c1   : > { %1749 = vmatmul.mubr.bf16.vlgmr.msra.gmra.mxu0 %v1538_v4  ;;  %4100 = vmatmul.mubr.bf16.vlgmr.msra.gmra.mxu1 %v1538_v4 }
 0x2c2   : > { %4105 = vmatprep.mubr.msk.bf16.mxu1 %vm4671_vm0, %v4669_v20  ;;  %4129 = vmatprep.mubr.msk.bf16.mxu0 %vm4671_vm0, %v4669_v20 }
 0x381   : > { %v1750_v8 = vpop.f32.mrf.mxu0  ;;  %v1793_v9 = vpop.f32.mrf.mxu1 }
 0x382   : > { %v1751_v29 = vadd.f32 %v1750_v8, %v1576_v24  ;;  %v1794_v30 = vadd.f32 %v1793_v9, %v1584_v26 }
 0x383   : > { %v1752_v11 = vpop.f32.mrf.mxu0  ;;  %v4101_v12 = vpop.f32.mrf.mxu1 }
 0x384   : > { %v1753_v19 = vadd.f32 %v1752_v11, %v1580_v13 }
 0x385   : > { %v1754_v14 = vpop.f32.mrf.mxu0  ;;  %v1796_v15 = vpop.f32.mrf.mxu1 }
 0x386   : > { %v1755_v27 = vadd.f32 %v1754_v14, %v1576_v24  ;;  %v1797_v28 = vadd.f32 %v1796_v15, %v1584_v26 }
 0x387   : > { %v1756_v16 = vpop.f32.mrf.mxu0  ;;  %v4102_v17 = vpop.f32.mrf.mxu1 }
 0x388   : > { %v1757_v21 = vadd.f32 %v1756_v16, %v1580_v13  ;;  %v1800_v31 = vpack.c.bf16 %v1755_v27, %v1751_v29  ;;  %v5231_v32 = vpack.c.bf16 %v1797_v28, %v1794_v30  ;;  %v3826_v27 = vld [vmem:[%s5618_s19 + $0x20] sm:$0xff] }
 0x38a   : > { %v1801_v23 = vpack.c.bf16 %v1757_v21, %v1753_v19 }
 0x38c   : > { %v1808_v25 = vsel %vm1803_vm1, %v1801_v23, 0 }
 0x38d   : > { %4104 = vmatpush3.bf16.xpose.msra.mxu1 %v1808_v25  ;;  %v3822_v25 = vld [vmem:[%s5618_s19 + $0x10] sm:$0xff] }
 0x38e   : > { %4109 = vmatprep.subr.bf16.mxu1 %v4669_v20 }
 0x394   : > { %4106 = vmatmul.mubr.msk.bf16.vlgmr.msra.gmra.mxu1 %vm1803_vm1, %v1800_v31 }
 0x395   : > { %4110 = vmatpush3.bf16.msra.mxu1 %v5231_v32  ;;  %4111 = vmatprep.mubr.msk.bf16.mxu1 %vm4671_vm0, %v4669_v20 }
 0x396   : > { %4115 = vmatprep.subr.bf16.mxu1 %v4669_v20 }
 0x454   : > { %v1844_v33 = vpop.f32.mrf.mxu1 }
 0x455   : > { %v1851_v35 = vmul.f32 0.17677669, %v1844_v33 }
 0x456   : > { %v4107_v36 = vpop.f32.mrf.mxu1 }
 0x457   : > { %v1855_v37 = vadd.f32 %v1853_v34, %v1851_v35  ;;  %v3823_v36 = vld [vmem:[%s5618_s19 + $0x18] sm:$0xff] }
 0x458   : > { %v1847_v38 = vpop.f32.mrf.mxu1 }
 0x459   : > { %v1852_v40 = vmul.f32 0.17677669, %v1847_v38  ;;  %v1858_v41 = vsel %vm1857_vm2, %v1855_v37, -inf }
 0x45a   : > { %1859 = vmax.xlane.f32.xlu0 %v1858_v41  ;;  %v4108_v42 = vpop.f32.mrf.mxu1  ;;  %v3827_v41 = vld [vmem:[%s5618_s19 + $0x28] sm:$0xff] }
 0x45b   : > { %v1856_v44 = vadd.f32 %v1854_v39, %v1852_v40  ;;  %v3831_v42 = vld [vmem:[%s5618_s19 + $0x38] sm:$0xff] }
 0x45d   : > { %v1861_v45 = vsel %vm1857_vm2, %v1856_v44, -inf }
 0x45e   : > { %1862 = vmax.xlane.f32.xlu1 %v1861_v45 }
 0x4e3   : > { %v1860_v46 = vpop.xlane.xlu0 %1859 }
 0x4e4   : > { %v1864_v47 = vsub.f32 %v1855_v37, %v1860_v46 }
 0x4e6   : > { %v1866_v48 = vmul.f32 1.442695, %v1864_v47 }
 0x4e7   : > { %v1863_v49 = vpop.xlane.xlu1 %1862 }
 0x4e8   : > { %4434 = vpow2.f32 %v1866_v48  ;;  %v1865_v50 = vsub.f32 %v1856_v44, %v1863_v49 }
 0x4ea   : > { %v1868_v51 = vmul.f32 1.442695, %v1865_v50  ;;  %v3830_v50 = vld [vmem:[%s5618_s19 + $0x30] sm:$0xff] }
 0x4ec   : > { %4436 = vpow2.f32 %v1868_v51 }
 0x4f5   : > { %v4435_v52 = vpop.eup %4434 }
 0x4f6   : > { %v1870_v53 = vsel %vm1857_vm2, %v4435_v52, 0.0 }
 0x4f7   : > { %1871 = vadd.xlane.f32.xlu0 %v1870_v53 }
 0x4f9   : > { %v4437_v54 = vpop.eup %4436 }
 0x4fa   : > { %v1873_v55 = vsel %vm1857_vm2, %v4437_v54, 0.0 }
 0x4fb   : > { %1874 = vadd.xlane.f32.xlu1 %v1873_v55 }
 0x50c   : > { %1928 = vrot.lane.b32.xlu1 %v1800_v31, %s4672_s24 }
 0x50d   : > { %1931 = vrot.lane.b32.xlu0 %v1801_v23, %s4672_s24 }
 0x510   : > { %2071 = vrot.lane.b32.xlu1 %v1801_v23, %s4673_s26 }
 0x511   : > { %2210 = vrot.lane.b32.xlu0 %v1801_v23, %s4674_s22 }
 0x514   : > { %2069 = vrot.lane.b32.xlu1 %v1800_v31, %s4673_s26 }
 0x518   : > { %2208 = vrot.lane.b32.xlu1 %v1800_v31, %s4674_s22 }
 0x580   : > { %v1872_v56 = vpop.xlane.xlu0 %1871 }
 0x581   : > { %4438 = vrcp.f32 %v1872_v56 }
 0x584   : > { %v1875_v57 = vpop.xlane.xlu1 %1874  ;;  %v1932_v59 = vpop.permute.xlu0 %1931 }
 0x585   : > { %4440 = vrcp.f32 %v1875_v57  ;;  %v1937_v8 = vsel %vm1803_vm1, %v1932_v59, 0 }
 0x588   : > { %v1929_v58 = vpop.permute.xlu1 %1928  ;;  %v2211_v0 = vpop.permute.xlu0 %2210 }
 0x589   : > { %v2216_v4 = vsel %vm1803_vm1, %v2211_v0, 0 }
 0x58c   : > { %v2072_v60 = vpop.permute.xlu1 %2071 }
 0x58d   : > { %v2077_v61 = vsel %vm1803_vm1, %v2072_v60, 0 }
 0x58e   : > { %4128 = vmatpush3.bf16.xpose.msra.mxu0 %v2077_v61  ;;  %v4439_v62 = vpop.eup %4438 }
 0x58f   : > { %4139 = vmatprep.subr.bf16.mxu0 %v4669_v20  ;;  %v1878_v1 = vmul.f32 %v4439_v62, %v4435_v52 }
 0x590   : > { %v2070_v3 = vpop.permute.xlu1 %2069 }
 0x592   : > { %v4441_v63 = vpop.eup %4440 }
 0x593   : > { %v1879_v2 = vmul.f32 %v4441_v63, %v4437_v54 }
 0x594   : > { %v2209_v9 = vpop.permute.xlu1 %2208 }
 0x595   : > { %4130 = vmatmul.mubr.msk.bf16.vlgmr.msra.gmra.mxu0 %vm1803_vm1, %v2070_v3  ;;  %v1880_v5 = vpack.c.bf16 %v1879_v2, %v1878_v1 }
 0x596   : > { %4140 = vmatpush3.bf16.xpose.msra.mxu0 %v2216_v4  ;;  %4141 = vmatprep.mubr.msk.bf16.mxu0 %vm4671_vm0, %v4669_v20 }
 0x597   : > { %4112 = vmatmul.mubr.msk.bf16.vlgmr.msra.gmra.mxu1 %vm1857_vm2, %v1880_v5  ;;  %4151 = vmatprep.subr.bf16.mxu0 %v4669_v20 }
 0x598   : > { %4116 = vmatpush3.bf16.xpose.msra.mxu1 %v1937_v8  ;;  %4117 = vmatprep.mubr.msk.bf16.mxu1 %vm4671_vm0, %v4669_v20 }
 0x599   : > { %4121 = vmatprep.subr.bf16.mxu1 %v4669_v20 }
 0x59d   : > { %4142 = vmatmul.mubr.msk.bf16.vlgmr.msra.gmra.mxu0 %vm1803_vm1, %v2209_v9 }
 0x59e   : > { %4167 = vmatprep.mubr.msk.bf16.mxu0 %vm4671_vm0, %v4669_v20 }
 0x59f   : > { %4118 = vmatmul.mubr.msk.bf16.vlgmr.msra.gmra.mxu1 %vm1803_vm1, %v1929_v58 }
 0x5a0   : > { %4123 = vmatprep.mubr.msk.bf16.mxu1 %vm4671_vm0, %v4669_v20 }
 0x655   : > { %v2113_v10 = vpop.f32.mrf.mxu0 }
 0x656   : > { %v2120_v21 = vmul.f32 0.17677669, %v2113_v10 }
 0x657   : > { %v1918_v11 = vpop.f32.mrf.mxu1  ;;  %v4131_v12 = vpop.f32.mrf.mxu0 }
 0x658   : > { %1925 = vst.msk [vmem:[#allocation3] sm:$0xff] %vm1803_vm1, %v1918_v11  ;;  %v2125_v35 = vadd.f32 %v3826_v27, %v2120_v21 }
 0x659   : > { %v4113_v13 = vpop.f32.mrf.mxu1  ;;  %v2116_v14 = vpop.f32.mrf.mxu0 }
 0x65a   : > { %v2121_v31 = vmul.f32 0.17677669, %v2116_v14  ;;  %v2127_v45 = vsel %vm1857_vm2, %v2125_v35, -inf }
 0x65b   : > { %v1921_v15 = vpop.f32.mrf.mxu1  ;;  %v4132_v16 = vpop.f32.mrf.mxu0 }
 0x65c   : > { %1926 = vst.msk [vmem:[#allocation3 + $0x8] sm:$0xff] %vm1803_vm1, %v1921_v15  ;;  %v2126_v48 = vadd.f32 %v3827_v41, %v2121_v31 }
 0x65d   : > { %v4114_v17 = vpop.f32.mrf.mxu1  ;;  %v2252_v19 = vpop.f32.mrf.mxu0 }
 0x65e   : > { %v2259_v46 = vmul.f32 0.17677669, %v2252_v19  ;;  %v2130_v51 = vsel %vm1857_vm2, %v2126_v48, -inf }
 0x65f   : > { %v1973_v23 = vpop.f32.mrf.mxu1  ;;  %v4143_v24 = vpop.f32.mrf.mxu0 }
 0x660   : > { %v1980_v26 = vmul.f32 0.17677669, %v1973_v23  ;;  %v2264_v53 = vadd.f32 %v3830_v50, %v2259_v46 }
 0x661   : > { %v4119_v28 = vpop.f32.mrf.mxu1  ;;  %v2255_v29 = vpop.f32.mrf.mxu0 }
 0x662   : > { %v1985_v30 = vadd.f32 %v3822_v25, %v1980_v26  ;;  %v2260_v37 = vmul.f32 0.17677669, %v2255_v29  ;;  %v2266_v54 = vsel %vm1857_vm2, %v2264_v53, -inf }
 0x663   : > { %v1976_v33 = vpop.f32.mrf.mxu1  ;;  %v4144_v34 = vpop.f32.mrf.mxu0 }
 0x664   : > { %v1981_v38 = vmul.f32 0.17677669, %v1976_v33  ;;  %v1987_v39 = vsel %vm1857_vm2, %v1985_v30, -inf  ;;  %v2265_v49 = vadd.f32 %v3831_v42, %v2260_v37 }
 0x665   : > { %1988 = vmax.xlane.f32.xlu0 %v1987_v39  ;;  %v4120_v40 = vpop.f32.mrf.mxu1 }
 0x666   : > { %v1986_v44 = vadd.f32 %v3823_v36, %v1981_v38  ;;  %v2269_v52 = vsel %vm1857_vm2, %v2265_v49, -inf }
 0x668   : > { %v1990_v47 = vsel %vm1857_vm2, %v1986_v44, -inf }
 0x669   : > { %2128 = vmax.xlane.f32.xlu0 %v2127_v45  ;;  %1991 = vmax.xlane.f32.xlu1 %v1990_v47 }
 0x66d   : > { %2131 = vmax.xlane.f32.xlu0 %v2130_v51  ;;  %2270 = vmax.xlane.f32.xlu1 %v2269_v52  ;;  %v4342_v51 = vld [vmem:[%s4936_s20 + $0x38] sm:$0xff]   ;;  %v4343_v52 = vld [vmem:[%s4936_s20 + $0x30] sm:$0xff]  }
 0x66e   : > { %4152 = vmatpush3.bf16.msra.mxu0 %v4342_v51  ;;  %v4367_v51 = vld [vmem:[%s4963_s29 + $0xac] ss:$16 sps:$4 sm:$0xff]  }
 0x66f   : > { %4153 = vmatprep.subr.bf16.mxu0 %v4669_v20 }
 0x671   : > { %2267 = vmax.xlane.f32.xlu0 %v2266_v54  ;;  %v4345_v54 = vld [vmem:[%s4936_s20 + $0x20] sm:$0xff]  }
 0x672   : > { %4154 = vmatpush3.bf16.msra.mxu0 %v4343_v52  ;;  %v4362_v52 = vld [vmem:[%s4963_s29 + $0xa0] ss:$16 sps:$4 sm:$0xff]  }
 0x673   : > { %4155 = vmatprep.subr.bf16.mxu0 %v4669_v20 }
 0x6ee   : > { %v1989_v55 = vpop.xlane.xlu0 %1988 }
 0x6ef   : > { %v1993_v0 = vsub.f32 %v1985_v30, %v1989_v55 }
 0x6f1   : > { %v1995_v8 = vmul.f32 1.442695, %v1993_v0  ;;  %v4349_v0 = vld [vmem:[%s4936_s20] sm:$0xff]  }
 0x6f2   : > { %v2129_v56 = vpop.xlane.xlu0 %2128  ;;  %v1992_v57 = vpop.xlane.xlu1 %1991 }
 0x6f3   : > { %v2133_v58 = vsub.f32 %v2125_v35, %v2129_v56  ;;  %v1994_v1 = vsub.f32 %v1986_v44, %v1992_v57  ;;  %v4346_v56 = vld [vmem:[%s4936_s20 + $0x18] sm:$0xff]  }
 0x6f5   : > { %v2135_v59 = vmul.f32 1.442695, %v2133_v58  ;;  %v1997_v9 = vmul.f32 1.442695, %v1994_v1 }
 0x6f6   : > { %v2132_v60 = vpop.xlane.xlu0 %2131  ;;  %v2271_v61 = vpop.xlane.xlu1 %2270 }
 0x6f7   : > { %4442 = vpow2.f32 %v2135_v59  ;;  %v2134_v62 = vsub.f32 %v2126_v48, %v2132_v60  ;;  %v2273_v63 = vsub.f32 %v2265_v49, %v2271_v61  ;;  %v4347_v59 = vld [vmem:[%s4936_s20 + $0x10] sm:$0xff]  }
 0x6f9   : > { %v2137_v2 = vmul.f32 1.442695, %v2134_v62  ;;  %v2276_v3 = vmul.f32 1.442695, %v2273_v63  ;;  %v4348_v62 = vld [vmem:[%s4936_s20 + $0x8] sm:$0xff]  }
 0x6fa   : > { %v2268_v4 = vpop.xlane.xlu0 %2267 }
 0x6fb   : > { %4444 = vpow2.f32 %v2137_v2  ;;  %v2272_v5 = vsub.f32 %v2264_v53, %v2268_v4  ;;  %v4344_v53 = vld [vmem:[%s4936_s20 + $0x28] sm:$0xff]  }
 0x6fc   : > { %4446 = vpow2.f32 %v2276_v3  ;;  %4156 = vmatpush3.bf16.msra.mxu0 %v4344_v53  ;;  %v4365_v53 = vld [vmem:[%s4963_s29 + $0xa8] ss:$16 sps:$4 sm:$0xff]  }
 0x6fd   : > { %v2274_v10 = vmul.f32 1.442695, %v2272_v5  ;;  %4157 = vmatprep.subr.bf16.mxu0 %v4669_v20 }
 0x6ff   : > { %4448 = vpow2.f32 %v2274_v10 }
 0x700   : > { %4450 = vpow2.f32 %v1995_v8  ;;  %4158 = vmatpush3.bf16.msra.mxu0 %v4345_v54  ;;  %v4368_v54 = vld [vmem:[%s4963_s29 + $0x80] ss:$16 sps:$4 sm:$0xff]  }
 0x701   : > { %4452 = vpow2.f32 %v1997_v9  ;;  %4159 = vmatprep.subr.bf16.mxu0 %v4669_v20 }
 0x704   : > { %v4443_v11 = vpop.eup %4442  ;;  %4160 = vmatpush3.bf16.msra.mxu0 %v4346_v56  ;;  %v4371_v56 = vld [vmem:[%s4963_s29 + $0x88] ss:$16 sps:$4 sm:$0xff]  }
 0x705   : > { %v2139_v12 = vsel %vm1857_vm2, %v4443_v11, 0.0  ;;  %4161 = vmatprep.subr.bf16.mxu0 %v4669_v20 }
 0x706   : > { %2140 = vadd.xlane.f32.xlu0 %v2139_v12 }
 0x708   : > { %v4445_v13 = vpop.eup %4444  ;;  %4162 = vmatpush3.bf16.msra.mxu0 %v4347_v59  ;;  %v4379_v59 = vld [vmem:[%s4963_s29 + $0x6c] ss:$16 sps:$4 sm:$0xff]  }
 0x709   : > { %v2142_v14 = vsel %vm1857_vm2, %v4445_v13, 0.0  ;;  %v4447_v15 = vpop.eup %4446  ;;  %4163 = vmatprep.subr.bf16.mxu0 %v4669_v20 }
 0x70a   : > { %2143 = vadd.xlane.f32.xlu1 %v2142_v14  ;;  %v2281_v21 = vsel %vm1857_vm2, %v4447_v15, 0.0 }
 0x70c   : > { %v4449_v16 = vpop.eup %4448  ;;  %4164 = vmatpush3.bf16.msra.mxu0 %v4348_v62  ;;  %v4382_v62 = vld [vmem:[%s4963_s29 + $0x44] ss:$16 sps:$4 sm:$0xff]  }
 0x70d   : > { %v4451_v17 = vpop.eup %4450  ;;  %v2278_v19 = vsel %vm1857_vm2, %v4449_v16, 0.0  ;;  %4165 = vmatprep.subr.bf16.mxu0 %v4669_v20 }
 0x70e   : > { %v4453_v23 = vpop.eup %4452  ;;  %2279 = vadd.xlane.f32.xlu0 %v2278_v19  ;;  %2282 = vadd.xlane.f32.xlu1 %v2281_v21  ;;  %v1999_v24 = vsel %vm1857_vm2, %v4451_v17, 0.0  ;;  %v3842_v21 = vld [vmem:[%s5620_s2] ss:$0 sm:$0xff] }
 0x70f   : > { %v2002_v25 = vsel %vm1857_vm2, %v4453_v23, 0.0 }
 0x710   : > { %4166 = vmatpush3.bf16.msra.mxu0 %v4349_v0  ;;  %v4380_v0 = vld [vmem:[%s4963_s29 + $0x40] ss:$16 sps:$4 sm:$0xff]  }
 0x712   : > { %2000 = vadd.xlane.f32.xlu0 %v1999_v24  ;;  %2003 = vadd.xlane.f32.xlu1 %v2002_v25 }
 0x723   : > { %2150 = vrot.lane.b32.xlu1 %v5231_v32, %s4673_s26 }
 0x727   : > { %2289 = vrot.lane.b32.xlu1 %v5231_v32, %s4674_s22 }
 0x728   : > { %2011 = vrot.lane.b32.xlu0 %v5231_v32, %s4672_s24 }
 0x78f   : > { %v2141_v26 = vpop.xlane.xlu0 %2140 }
 0x793   : > { %v2144_v27 = vpop.xlane.xlu1 %2143 }
 0x797   : > { %v2280_v28 = vpop.xlane.xlu0 %2279  ;;  %v2283_v29 = vpop.xlane.xlu1 %2282 }
 0x79b   : > { %v2001_v30 = vpop.xlane.xlu0 %2000  ;;  %v2004_v31 = vpop.xlane.xlu1 %2003 }
 0x79c   : > { %4454 = vrcp.f32 %v2001_v30 }
 0x79d   : > { %4456 = vrcp.f32 %v2004_v31  ;;  %v4487_v31 = vld [vmem:[#allocation2 + $0x8] sm:$0xff] }
 0x79e   : > { %4458 = vrcp.f32 %v2144_v27  ;;  %v4486_v27 = vld [vmem:[#allocation2] sm:$0xff] }
 0x79f   : > { %v2012_v33 = vpop.permute.xlu0 %2011  ;;  %4460 = vrcp.f32 %v2141_v26  ;;  %v2151_v39 = vpop.permute.xlu1 %2150 }
 0x7a0   : > { %4122 = vmatpush3.bf16.msra.mxu1 %v2012_v33  ;;  %4462 = vrcp.f32 %v2280_v28 }
 0x7a1   : > { %4133 = vmatprep.subr.bf16.mxu1 %v4669_v20  ;;  %4464 = vrcp.f32 %v2283_v29 }
 0x7a3   : > { %v2290_v47 = vpop.permute.xlu1 %2289 }
 0x7a9   : > { %v4455_v34 = vpop.eup %4454 }
 0x7aa   : > { %v4457_v35 = vpop.eup %4456  ;;  %v2007_v36 = vmul.f32 %v4455_v34, %v4451_v17  ;;  %v3833_v17 = vld [vmem:[%s5619_s23] ss:$0 sm:$0xff] }
 0x7ab   : > { %v2008_v32 = vmul.f32 %v4457_v35, %v4453_v23  ;;  %v4459_v38 = vpop.eup %4458  ;;  %v4350_v34 = vld [vmem:[%s4963_s29 + $0xe0] ss:$16 sps:$4 sm:$0xff]   ;;  %v4352_v35 = vld [vmem:[%s4963_s29 + $0xe4] ss:$16 sps:$4 sm:$0xff]  }
 0x7ac   : > { %v4461_v40 = vpop.eup %4460  ;;  %v2148_v41 = vmul.f32 %v4459_v38, %v4445_v13 }
 0x7ad   : > { %v2009_v37 = vpack.c.bf16 %v2008_v32, %v2007_v36  ;;  %v2147_v42 = vmul.f32 %v4461_v40, %v4443_v11  ;;  %v4463_v44 = vpop.eup %4462  ;;  %v4353_v36 = vld [vmem:[%s4963_s29 + $0xe8] ss:$16 sps:$4 sm:$0xff]   ;;  %v4355_v32 = vld [vmem:[%s4963_s29 + $0xec] ss:$16 sps:$4 sm:$0xff]  }
 0x7ae   : > { %v4465_v46 = vpop.eup %4464  ;;  %v2286_v48 = vmul.f32 %v4463_v44, %v4449_v16  ;;  %2771 = vmatprep.subr.bf16.mxu0 %v4355_v32  ;;  %v4402_v32 = vld [vmem:[%s4974_s7 + $0x70] sm:$0xff]  }
 0x7af   : > { %4124 = vmatmul.mubr.msk.bf16.vlgmr.msra.gmra.mxu1 %vm1857_vm2, %v2009_v37  ;;  %v2149_v45 = vpack.c.bf16 %v2148_v41, %v2147_v42  ;;  %v2287_v49 = vmul.f32 %v4465_v46, %v4447_v15  ;;  %v4358_v46 = vld [vmem:[%s4963_s29 + $0xc4] ss:$16 sps:$4 sm:$0xff]  }
 0x7b0   : > { %4134 = vmatpush3.bf16.msra.mxu1 %v2151_v39  ;;  %4135 = vmatprep.mubr.msk.bf16.mxu1 %vm4671_vm0, %v4669_v20 }
 0x7b1   : > { %4145 = vmatprep.subr.bf16.mxu1 %v4669_v20  ;;  %v2288_v50 = vpack.c.bf16 %v2287_v49, %v2286_v48  ;;  %v4356_v48 = vld [vmem:[%s4963_s29 + $0xc0] ss:$16 sps:$4 sm:$0xff]   ;;  %v4359_v49 = vld [vmem:[%s4963_s29 + $0xc8] ss:$16 sps:$4 sm:$0xff]  }
 0x7b7   : > { %4136 = vmatmul.mubr.msk.bf16.vlgmr.msra.gmra.mxu1 %vm1857_vm2, %v2149_v45 }
 0x7b8   : > { %4146 = vmatpush3.bf16.msra.mxu1 %v2290_v47  ;;  %4147 = vmatprep.mubr.msk.bf16.mxu1 %vm4671_vm0, %v4669_v20  ;;  %v4361_v47 = vld [vmem:[%s4963_s29 + $0xcc] ss:$16 sps:$4 sm:$0xff]  }
 0x7b9   : > { %2728 = vmatprep.subr.bf16.mxu1 %v4352_v35  ;;  %v4400_v35 = vld [vmem:[%s4974_s7 + $0x38] sm:$0xff]  }
 0x7bf   : > { %4148 = vmatmul.mubr.msk.bf16.vlgmr.msra.gmra.mxu1 %vm1857_vm2, %v2288_v50  ;;  %v4364_v50 = vld [vmem:[%s4963_s29 + $0xa4] ss:$16 sps:$4 sm:$0xff]  }
 0x7c0   : > { %2760 = vmatprep.mubr.bf16.mxu1 %v4670_v43  ;;  %2729 = vmatpush1.bf16.msra.mxu1 %v4350_v34  ;;  %v4399_v34 = vld [vmem:[%s4974_s7 + $0xf8] sm:$0xff]  }
 0x7c1   : > { %2730 = vmatprep.subr.bf16.mxu1 %v4358_v46  ;;  %v4411_v46 = vld [vmem:[%s4974_s7 + $0xe0] sm:$0xff]  }
 0x7c4   : > { %2731 = vmatpush1.bf16.msra.mxu1 %v4356_v48  ;;  %v4413_v48 = vld [vmem:[%s4974_s7 + $0xa0] sm:$0xff]  }
 0x7c5   : > { %2732 = vmatprep.subr.bf16.mxu1 %v4364_v50  ;;  %v4415_v50 = vld [vmem:[%s4974_s7 + $0xd8] sm:$0xff]  }
 0x7c8   : > { %2733 = vmatpush1.bf16.msra.mxu1 %v4362_v52  ;;  %v4417_v52 = vld [vmem:[%s4974_s7 + $0x98] sm:$0xff]  }
 0x86f   : > { %v2051_v55 = vpop.f32.mrf.mxu1 }
 0x870   : > { %2060 = vrot.lane.b32.xlu1 %v2051_v55, %s4674_s22  ;;  %v4370_v55 = vld [vmem:[%s4963_s29 + $0x84] ss:$16 sps:$4 sm:$0xff]  }
 0x871   : > { %v4125_v57 = vpop.f32.mrf.mxu1  ;;  %2734 = vmatprep.subr.bf16.mxu1 %v4370_v55  ;;  %v4420_v55 = vld [vmem:[%s4974_s7 + $0x10] sm:$0xff]  }
 0x872   : > { %v4373_v57 = vld [vmem:[%s4963_s29 + $0x8c] ss:$16 sps:$4 sm:$0xff]   ;;  %2735 = vmatpush1.bf16.msra.mxu1 %v4368_v54  ;;  %v4419_v54 = vld [vmem:[%s4974_s7 + $0xd0] sm:$0xff]  }
 0x873   : > { %v2054_v58 = vpop.f32.mrf.mxu1 }
 0x874   : > { %2062 = vrot.lane.b32.xlu0 %v2054_v58, %s4674_s22  ;;  %v4376_v58 = vld [vmem:[%s4963_s29 + $0x64] ss:$16 sps:$4 sm:$0xff]  }
 0x875   : > { %v4126_v60 = vpop.f32.mrf.mxu1  ;;  %2736 = vmatprep.subr.bf16.mxu1 %v4376_v58  ;;  %v4423_v58 = vld [vmem:[%s4974_s7 + $0xc8] sm:$0xff]  }
 0x876   : > { %v4374_v60 = vld [vmem:[%s4963_s29 + $0x60] ss:$16 sps:$4 sm:$0xff]  }
 0x877   : > { %v2190_v61 = vpop.f32.mrf.mxu1  ;;  %2737 = vmatpush1.bf16.msra.mxu1 %v4374_v60  ;;  %v4425_v60 = vld [vmem:[%s4974_s7 + $0x88] sm:$0xff]  }
 0x878   : > { %2199 = vrot.lane.b32.xlu1 %v2190_v61, %s4673_s26  ;;  %v4377_v61 = vld [vmem:[%s4963_s29 + $0x68] ss:$16 sps:$4 sm:$0xff]   ;;  %2738 = vmatprep.subr.bf16.mxu1 %v4382_v62  ;;  %v4427_v62 = vld [vmem:[%s4974_s7 + $0xc0] sm:$0xff]  }
 0x879   : > { %v4137_v63 = vpop.f32.mrf.mxu1 }
 0x87a   : > { %v4385_v63 = vld [vmem:[%s4963_s29 + $0x4c] ss:$16 sps:$4 sm:$0xff]  }
 0x87b   : > { %v2193_v1 = vpop.f32.mrf.mxu1  ;;  %2739 = vmatpush1.bf16.msra.mxu1 %v4380_v0  ;;  %v4429_v0 = vld [vmem:[%s4974_s7 + $0x80] sm:$0xff]  }
 0x87c   : > { %2201 = vrot.lane.b32.xlu0 %v2193_v1, %s4673_s26  ;;  %v4383_v1 = vld [vmem:[%s4963_s29 + $0x48] ss:$16 sps:$4 sm:$0xff]   ;;  %s5622_s26 = scalar_lea.vmem %s5551_s12, %s4916_s21 }
 0x87d   : > { %v4138_v2 = vpop.f32.mrf.mxu1 }
 0x87e   : > { %v4388_v2 = vld [vmem:[%s4963_s29 + $0x24] ss:$16 sps:$4 sm:$0xff]  }
 0x87f   : > { %v2329_v3 = vpop.f32.mrf.mxu1  ;;  %2740 = vmatprep.subr.bf16.mxu1 %v4388_v2  ;;  %v2562_v2 = vsub.s32 3, %v5215_v6 }
 0x880   : > { %2338 = vrot.lane.b32.xlu1 %v2329_v3, %s4672_s24  ;;  %v4391_v3 = vld [vmem:[%s4963_s29 + $0x2c] ss:$16 sps:$4 sm:$0xff]  }
 0x881   : > { %v4149_v4 = vpop.f32.mrf.mxu1 }
 0x882   : > { %v4386_v4 = vld [vmem:[%s4963_s29 + $0x20] ss:$16 sps:$4 sm:$0xff]  }
 0x883   : > { %v2332_v5 = vpop.f32.mrf.mxu1  ;;  %2741 = vmatpush1.bf16.msra.mxu1 %v4386_v4 }
 0x884   : > { %2340 = vrot.lane.b32.xlu0 %v2332_v5, %s4672_s24  ;;  %v4389_v5 = vld [vmem:[%s4963_s29 + $0x28] ss:$16 sps:$4 sm:$0xff]  }
 0x885   : > { %v4150_v8 = vpop.f32.mrf.mxu1 }
 0x886   : > { %v4394_v8 = vld [vmem:[%s4963_s29 + $0x4] ss:$16 sps:$4 sm:$0xff]  }
 0x887   : > { %2742 = vmatprep.subr.bf16.mxu1 %v4394_v8 }
 0x8e2   : > { %v2061_v9 = vpop.permute.xlu1 %2060 }
 0x8e3   : > { %2067 = vst.msk [vmem:[#allocation3] sm:$0xff] %vm2066_vm3, %v2061_v9  ;;  %v4397_v9 = vld [vmem:[%s4963_s29 + $0xc] ss:$16 sps:$4 sm:$0xff]  }
 0x8e6   : > { %v2063_v10 = vpop.permute.xlu0 %2062 }
 0x8e7   : > { %2068 = vst.msk [vmem:[#allocation3 + $0x8] sm:$0xff] %vm2066_vm3, %v2063_v10  ;;  %v4392_v10 = vld [vmem:[%s4963_s29] ss:$16 sps:$4 sm:$0xff]  }
 0x8e8   : > { %2743 = vmatpush1.bf16.msra.mxu1 %v4392_v10 }
 0x8ea   : > { %v2200_v20 = vpop.permute.xlu1 %2199 }
 0x8eb   : > { %2206 = vst.msk [vmem:[#allocation3] sm:$0xff] %vm2205_vm4, %v2200_v20  ;;  %v4395_v20 = vld [vmem:[%s4963_s29 + $0x8] ss:$16 sps:$4 sm:$0xff]  }
 0x8ee   : > { %v2202_v11 = vpop.permute.xlu0 %2201 }
 0x8ef   : > { %2207 = vst.msk [vmem:[#allocation3 + $0x8] sm:$0xff] %vm2205_vm4, %v2202_v11 }
 0x8f2   : > { %v2339_v12 = vpop.permute.xlu1 %2338 }
 0x8f3   : > { %2345 = vst.msk [vmem:[#allocation3] sm:$0xff] %vm2344_vm5, %v2339_v12 }
 0x8f6   : > { %v2341_v13 = vpop.permute.xlu0 %2340 }
 0x8f7   : > { %2346 = vst.msk [vmem:[#allocation3 + $0x8] sm:$0xff] %vm2344_vm5, %v2341_v13 }
 0x8fa   : > { %v2347_v14 = vld [vmem:[#allocation3] sm:$0xff] }
 0x8fe   : > { %v2348_v15 = vld [vmem:[#allocation3 + $0x8] sm:$0xff] }
 0x8ff   : > { %v2349_v16 = vpack.c.bf16 %v2348_v15, %v2347_v14 }
 0x901   : > { %4168 = vmatmul.mubr.bf16.vlgmr.msra.gmra.mxu0 %v2349_v16 }
 0x902   : > { %2803 = vmatprep.mubr.bf16.mxu0 %v4670_v43  ;;  %2772 = vmatpush1.bf16.msra.mxu0 %v4353_v36  ;;  %v4401_v36 = vld [vmem:[%s4974_s7 + $0xb8] sm:$0xff]  }
 0x903   : > { %2773 = vmatprep.subr.bf16.mxu0 %v4361_v47  ;;  %v4412_v47 = vld [vmem:[%s4974_s7 + $0x20] sm:$0xff]  }
 0x906   : > { %2774 = vmatpush1.bf16.msra.mxu0 %v4359_v49  ;;  %v4414_v49 = vld [vmem:[%s4974_s7 + $0x58] sm:$0xff]  }
 0x907   : > { %2775 = vmatprep.subr.bf16.mxu0 %v4367_v51  ;;  %v4416_v51 = vld [vmem:[%s4974_s7 + $0x18] sm:$0xff]  }
 0x90a   : > { %2776 = vmatpush1.bf16.msra.mxu0 %v4365_v53  ;;  %v4418_v53 = vld [vmem:[%s4974_s7 + $0x50] sm:$0xff]  }
 0x90b   : > { %2777 = vmatprep.subr.bf16.mxu0 %v4373_v57  ;;  %v4422_v57 = vld [vmem:[%s4974_s7 + $0x48] sm:$0xff]  }
 0x90e   : > { %2778 = vmatpush1.bf16.msra.mxu0 %v4371_v56  ;;  %v4421_v56 = vld [vmem:[%s4974_s7 + $0x90] sm:$0xff]  }
 0x90f   : > { %2779 = vmatprep.subr.bf16.mxu0 %v4379_v59  ;;  %v4424_v59 = vld [vmem:[%s4974_s7 + $0x8] sm:$0xff]  }
 0x912   : > { %2780 = vmatpush1.bf16.msra.mxu0 %v4377_v61  ;;  %v4426_v61 = vld [vmem:[%s4974_s7 + $0x40] sm:$0xff]  }
 0x913   : > { %2781 = vmatprep.subr.bf16.mxu0 %v4385_v63  ;;  %v4428_v63 = vld [vmem:[%s4974_s7] sm:$0xff]  }
 0x916   : > { %2782 = vmatpush1.bf16.msra.mxu0 %v4383_v1  ;;  %v2546_v1 = vld [vmem:[%s4969_s18] sm:$0xf] }
 0x917   : > { %2783 = vmatprep.subr.bf16.mxu0 %v4391_v3  ;;  %v2551_v3 = vrot.slane %v2546_v1, %v5223_v18  ;;  %v2559_v4 = vrot.slane %v2546_v1, %v1583_v22  ;;  %v2563_v8 = vrot.slane %v2546_v1, %v2562_v2 }
 0x91a   : > { %2784 = vmatpush1.bf16.msra.mxu0 %v4389_v5  ;;  %v2555_v5 = vrot.slane %v2546_v1, %v5218_v7 }
 0x91b   : > { %2785 = vmatprep.subr.bf16.mxu0 %v4397_v9 }
 0x91e   : > { %2786 = vmatpush1.bf16.msra.mxu0 %v4395_v20 }
 0x91f   : > { %4061 = vmatprep.subr.bf16.mxu0 %v4399_v34 }
 0x9c1   : > { %v2455_v19 = vpop.f32.mrf.mxu0 }
 0x9c2   : > { %v2456_v23 = vadd.f32 %v3833_v17, %v2455_v19 }
 0x9c3   : > { %v4169_v24 = vpop.f32.mrf.mxu0 }
 0x9c4   : > { %v2469_v25 = vmul.f32 %v3842_v21, %v2456_v23 }
 0x9c5   : > { %v2458_v26 = vpop.f32.mrf.mxu0 }
 0x9c6   : > { %v2459_v43 = vadd.f32 %v3833_v17, %v2458_v26  ;;  %v5336_v28 = vadd.f32 %v4486_v27, %v2469_v25  ;;  %v3844_v26 = vld [vmem:[%s5622_s26] ss:$0 sm:$0xff] }
 0x9c7   : > { %v4170_v29 = vpop.f32.mrf.mxu0 }
 0x9c8   : > { %v2470_v30 = vmul.f32 %v3842_v21, %v2459_v43  ;;  %2475 = vadd.xlane.f32.xlu1 %v5336_v28  ;;  %v3843_v21 = vld [vmem:[%s5621_s8] ss:$0 sm:$0xff] }
 0x9ca   : > { %v5339_v33 = vadd.f32 %v4487_v31, %v2470_v30  ;;  %v4398_v31 = vld [vmem:[%s4974_s7 + $0x78] sm:$0xff]  }
 0x9cb   : > { %4039 = vmatprep.subr.bf16.mxu1 %v4398_v31 }
 0x9cc   : > { %2477 = vadd.xlane.f32.xlu0 %v5339_v33 }
 0xa51   : > { %v2476_v37 = vpop.xlane.xlu1 %2475 }
 0xa52   : > { %v2479_v38 = vmul.f32 0.0078125, %v2476_v37  ;;  %v4403_v37 = vld [vmem:[%s4974_s7 + $0xf0] sm:$0xff]  }
 0xa54   : > { %v5347_v39 = vsub.f32 %v5336_v28, %v2479_v38  ;;  %v4404_v38 = vld [vmem:[%s4974_s7 + $0x30] sm:$0xff]  }
 0xa55   : > { %v2478_v40 = vpop.xlane.xlu0 %2477 }
 0xa56   : > { %v2480_v41 = vmul.f32 0.0078125, %v2478_v40  ;;  %v2483_v42 = vmul.f32 %v5347_v39, %v5347_v39  ;;  %v4406_v40 = vld [vmem:[%s4974_s7 + $0x68] sm:$0xff]  }
 0xa58   : > { %v5352_v44 = vsub.f32 %v5339_v33, %v2480_v41  ;;  %2485 = vadd.xlane.f32.xlu0 %v2483_v42  ;;  %v4407_v41 = vld [vmem:[%s4974_s7 + $0xe8] sm:$0xff]  }
 0xa59   : > { %v4408_v42 = vld [vmem:[%s4974_s7 + $0x28] sm:$0xff]  }
 0xa5a   : > { %v2484_v45 = vmul.f32 %v5352_v44, %v5352_v44 }
 0xa5c   : > { %2487 = vadd.xlane.f32.xlu0 %v2484_v45  ;;  %v4410_v45 = vld [vmem:[%s4974_s7 + $0x60] sm:$0xff]  }
 0xae1   : > { %v2486_v11 = vpop.xlane.xlu0 %2485 }
 0xae2   : > { %v2489_v12 = vmul.f32 0.0078125, %v2486_v11 }
 0xae4   : > { %v2491_v13 = vadd.f32 1e-12, %v2489_v12 }
 0xae5   : > { %v2488_v14 = vpop.xlane.xlu0 %2487 }
 0xae6   : > { %4466 = vrsqrt.f32 %v2491_v13  ;;  %v2490_v15 = vmul.f32 0.0078125, %v2488_v14 }
 0xae8   : > { %v2492_v16 = vadd.f32 1e-12, %v2490_v15 }
 0xaea   : > { %4468 = vrsqrt.f32 %v2492_v16 }
 0xaf3   : > { %v4467_v17 = vpop.eup %4466 }
 0xaf4   : > { %v2495_v19 = vmul.f32 %v4467_v17, %v5347_v39  ;;  %v4405_v39 = vld [vmem:[%s4974_s7 + $0xb0] sm:$0xff]  }
 0xaf6   : > { %v2503_v25 = vmul.f32 %v3843_v21, %v2495_v19 }
 0xaf7   : > { %v4469_v23 = vpop.eup %4468 }
 0xaf8   : > { %v2496_v24 = vmul.f32 %v4469_v23, %v5352_v44  ;;  %v2511_v27 = vadd.f32 %v3844_v26, %v2503_v25  ;;  %v4409_v44 = vld [vmem:[%s4974_s7 + $0xa8] sm:$0xff]  }
 0xafa   : > { %v2504_v43 = vmul.f32 %v3843_v21, %v2496_v24 }
 0xafc   : > { %v2512_v29 = vadd.f32 %v3844_v26, %v2504_v43 }
 0xafe   : > { %v2513_v30 = vpack.c.bf16 %v2512_v29, %v2511_v27 }
 0xb00   : > { %2761 = vmatmul.mubr.bf16.vlgmr.msra.gmra.mxu1 %v2513_v30  ;;  %2804 = vmatmul.mubr.bf16.vlgmr.msra.gmra.mxu0 %v2513_v30 }
 0xb01   : > { %4040 = vmatpush3.bf16.msra.mxu1 %v4400_v35  ;;  %4062 = vmatpush3.bf16.msra.mxu0 %v4401_v36 }
 0xb02   : > { %4041 = vmatprep.subr.bf16.mxu1 %v4402_v32  ;;  %4063 = vmatprep.subr.bf16.mxu0 %v4403_v37 }
 0xb05   : > { %4042 = vmatpush3.bf16.msra.mxu1 %v4404_v38  ;;  %4064 = vmatpush3.bf16.msra.mxu0 %v4405_v39 }
 0xb06   : > { %4043 = vmatprep.subr.bf16.mxu1 %v4406_v40  ;;  %4065 = vmatprep.subr.bf16.mxu0 %v4407_v41 }
 0xb09   : > { %4044 = vmatpush3.bf16.msra.mxu1 %v4408_v42  ;;  %4066 = vmatpush3.bf16.msra.mxu0 %v4409_v44 }
 0xb0a   : > { %4045 = vmatprep.subr.bf16.mxu1 %v4410_v45  ;;  %4067 = vmatprep.subr.bf16.mxu0 %v4411_v46 }
 0xb0d   : > { %4046 = vmatpush3.bf16.msra.mxu1 %v4412_v47  ;;  %4068 = vmatpush3.bf16.msra.mxu0 %v4413_v48 }
 0xb0e   : > { %4047 = vmatprep.subr.bf16.mxu1 %v4414_v49  ;;  %4069 = vmatprep.subr.bf16.mxu0 %v4415_v50 }
 0xb11   : > { %4048 = vmatpush3.bf16.msra.mxu1 %v4416_v51  ;;  %4070 = vmatpush3.bf16.msra.mxu0 %v4417_v52 }
 0xb12   : > { %4049 = vmatprep.subr.bf16.mxu1 %v4418_v53  ;;  %4071 = vmatprep.subr.bf16.mxu0 %v4419_v54 }
 0xb15   : > { %4050 = vmatpush3.bf16.msra.mxu1 %v4420_v55  ;;  %4072 = vmatpush3.bf16.msra.mxu0 %v4421_v56 }
 0xb16   : > { %4051 = vmatprep.subr.bf16.mxu1 %v4422_v57  ;;  %4073 = vmatprep.subr.bf16.mxu0 %v4423_v58 }
 0xb19   : > { %4052 = vmatpush3.bf16.msra.mxu1 %v4424_v59  ;;  %4074 = vmatpush3.bf16.msra.mxu0 %v4425_v60 }
 0xb1a   : > { %4053 = vmatprep.subr.bf16.mxu1 %v4426_v61  ;;  %4075 = vmatprep.subr.bf16.mxu0 %v4427_v62 }
 0xb1d   : > { %4054 = vmatpush3.bf16.msra.mxu1 %v4428_v63  ;;  %4076 = vmatpush3.bf16.msra.mxu0 %v4429_v0 }
 0xbc0   : > { %v2762_v9 = vpop.f32.mrf.mxu1  ;;  %v2805_v10 = vpop.f32.mrf.mxu0 }
 0xbc1   : > { %v5434_v20 = vadd.f32 %v2762_v9, %v2551_v3  ;;  %v5436_v11 = vadd.f32 %v2805_v10, %v2559_v4 }
 0xbc2   : > { %v2764_v12 = vpop.f32.mrf.mxu1  ;;  %v2807_v13 = vpop.f32.mrf.mxu0 }
 0xbc3   : > { %v2814_v14 = vmul.f32 %v5434_v20, %v5434_v20  ;;  %v2816_v15 = vmul.f32 %v5436_v11, %v5436_v11  ;;  %v5442_v16 = vadd.f32 %v2764_v12, %v2555_v5  ;;  %v5444_v6 = vadd.f32 %v2807_v13, %v2563_v8 }
 0xbc4   : > { %v2766_v22 = vpop.f32.mrf.mxu1  ;;  %v2809_v17 = vpop.f32.mrf.mxu0 }
 0xbc5   : > { %v2822_v19 = vmul.f32 %v2814_v14, %v5434_v20  ;;  %v2824_v21 = vmul.f32 %v2816_v15, %v5436_v11  ;;  %v2815_v23 = vmul.f32 %v5442_v16, %v5442_v16  ;;  %v2817_v24 = vmul.f32 %v5444_v6, %v5444_v6 }
 0xbc6   : > { %v5452_v25 = vadd.f32 %v2766_v22, %v2551_v3  ;;  %v5454_v26 = vadd.f32 %v2809_v17, %v2559_v4  ;;  %v2768_v43 = vpop.f32.mrf.mxu1  ;;  %v2811_v27 = vpop.f32.mrf.mxu0 }
 0xbc7   : > { %v2830_v29 = vmul.f32 0.044715, %v2822_v19  ;;  %v2832_v30 = vmul.f32 0.044715, %v2824_v21  ;;  %v2823_v31 = vmul.f32 %v2815_v23, %v5442_v16  ;;  %v2825_v34 = vmul.f32 %v2817_v24, %v5444_v6 }
 0xbc8   : > { %v2818_v35 = vmul.f32 %v5452_v25, %v5452_v25  ;;  %v2820_v36 = vmul.f32 %v5454_v26, %v5454_v26  ;;  %v5462_v32 = vadd.f32 %v2768_v43, %v2555_v5  ;;  %v5464_v37 = vadd.f32 %v2811_v27, %v2563_v8 }
 0xbc9   : > { %v2838_v38 = vadd.f32 %v2830_v29, %v5434_v20  ;;  %v2840_v39 = vadd.f32 %v2832_v30, %v5436_v11  ;;  %v2831_v40 = vmul.f32 0.044715, %v2823_v31  ;;  %v2833_v41 = vmul.f32 0.044715, %v2825_v34 }
 0xbca   : > { %v2826_v42 = vmul.f32 %v2818_v35, %v5452_v25  ;;  %v2828_v44 = vmul.f32 %v2820_v36, %v5454_v26  ;;  %v2819_v45 = vmul.f32 %v5462_v32, %v5462_v32  ;;  %v2821_v46 = vmul.f32 %v5464_v37, %v5464_v37 }
 0xbcb   : > { %v2846_v47 = vmul.f32 0.7978846, %v2838_v38  ;;  %v2848_v48 = vmul.f32 0.7978846, %v2840_v39  ;;  %v2839_v49 = vadd.f32 %v2831_v40, %v5442_v16  ;;  %v2841_v50 = vadd.f32 %v2833_v41, %v5444_v6 }
 0xbcc   : > { %v2834_v51 = vmul.f32 0.044715, %v2826_v42  ;;  %v2836_v52 = vmul.f32 0.044715, %v2828_v44  ;;  %v2827_v53 = vmul.f32 %v2819_v45, %v5462_v32  ;;  %v2829_v54 = vmul.f32 %v2821_v46, %v5464_v37 }
 0xbcd   : > { %4470 = vtanh.f32 %v2846_v47  ;;  %v2847_v55 = vmul.f32 0.7978846, %v2839_v49  ;;  %v2849_v56 = vmul.f32 0.7978846, %v2841_v50 }
 0xbce   : > { %4472 = vtanh.f32 %v2848_v48  ;;  %v2842_v57 = vadd.f32 %v2834_v51, %v5452_v25  ;;  %v2844_v58 = vadd.f32 %v2836_v52, %v5454_v26  ;;  %v2835_v59 = vmul.f32 0.044715, %v2827_v53  ;;  %v3910_v53 = vld [vmem:[%s942_s28] ss:$0 sm:$0xff]  ;;  %s5623_s28 = sld [smem:[#allocation28_spill]] (!%p3911_p12) }
 0xbcf   : > { %4474 = vtanh.f32 %v2847_v55  ;;  %v2837_v60 = vmul.f32 0.044715, %v2829_v54 }
 0xbd0   : > { %4476 = vtanh.f32 %v2849_v56  ;;  %v2850_v61 = vmul.f32 0.7978846, %v2842_v57  ;;  %v2852_v62 = vmul.f32 0.7978846, %v2844_v58  ;;  %v2843_v63 = vadd.f32 %v2835_v59, %v5462_v32 }
 0xbd1   : > { %v2845_v0 = vadd.f32 %v2837_v60, %v5464_v37 }
 0xbd2   : > { %4478 = vtanh.f32 %v2850_v61  ;;  %v2851_v1 = vmul.f32 0.7978846, %v2843_v63 }
 0xbd3   : > { %4480 = vtanh.f32 %v2852_v62  ;;  %v2853_v2 = vmul.f32 0.7978846, %v2845_v0 }
 0xbd4   : > { %4482 = vtanh.f32 %v2851_v1 }
 0xbd5   : > { %4484 = vtanh.f32 %v2853_v2 }
 0xbda   : > { %v4471_v3 = vpop.eup %4470 }
 0xbdb   : > { %v4473_v4 = vpop.eup %4472  ;;  %v2862_v12 = vadd.f32 1.0, %v4471_v3 }
 0xbdc   : > { %v4475_v5 = vpop.eup %4474  ;;  %v2864_v15 = vadd.f32 1.0, %v4473_v4 }
 0xbdd   : > { %v4477_v8 = vpop.eup %4476  ;;  %v2863_v9 = vadd.f32 1.0, %v4475_v5  ;;  %v2870_v27 = vmul.f32 0.5, %v2862_v12 }
 0xbde   : > { %v2865_v13 = vadd.f32 1.0, %v4477_v8  ;;  %v2872_v34 = vmul.f32 0.5, %v2864_v15 }
 0xbdf   : > { %v4479_v10 = vpop.eup %4478  ;;  %v2871_v43 = vmul.f32 0.5, %v2863_v9  ;;  %v2878_v42 = vmul.f32 %v2870_v27, %v5434_v20  ;;  %v3877_v20 = vld [vmem:[%s939_s30] ss:$0 sm:$0xff] }
 0xbe0   : > { %v4481_v14 = vpop.eup %4480  ;;  %v2866_v22 = vadd.f32 1.0, %v4479_v10  ;;  %v2873_v31 = vmul.f32 0.5, %v2865_v13  ;;  %v2880_v46 = vmul.f32 %v2872_v34, %v5436_v11 }
 0xbe1   : > { %v4483_v17 = vpop.eup %4482  ;;  %v2868_v19 = vadd.f32 1.0, %v4481_v14  ;;  %v2879_v40 = vmul.f32 %v2871_v43, %v5442_v16 }
 0xbe2   : > { %v4485_v21 = vpop.eup %4484  ;;  %v2874_v23 = vmul.f32 0.5, %v2866_v22  ;;  %v2867_v24 = vadd.f32 1.0, %v4483_v17  ;;  %v2881_v44 = vmul.f32 %v2873_v31, %v5444_v6 }
 0xbe3   : > { %v2876_v29 = vmul.f32 0.5, %v2868_v19  ;;  %v2869_v30 = vadd.f32 1.0, %v4485_v21 }
 0xbe4   : > { %v2875_v35 = vmul.f32 0.5, %v2867_v24  ;;  %v2882_v36 = vmul.f32 %v2874_v23, %v5452_v25 }
 0xbe5   : > { %v2877_v38 = vmul.f32 0.5, %v2869_v30  ;;  %v2884_v39 = vmul.f32 %v2876_v29, %v5454_v26 }
 0xbe6   : > { %v2883_v41 = vmul.f32 %v2875_v35, %v5462_v32  ;;  %v2886_v49 = vpack.c.bf16 %v2882_v36, %v2878_v42 }
 0xbe7   : > { %v2885_v45 = vmul.f32 %v2877_v38, %v5464_v37  ;;  %v2888_v25 = vpack.c.bf16 %v2884_v39, %v2880_v46 }
 0xbe8   : > { %v2887_v47 = vpack.c.bf16 %v2883_v41, %v2879_v40 }
 0xbe9   : > { %v2889_v48 = vpack.c.bf16 %v2885_v45, %v2881_v44 }
 0xbea   : > { %3185 = vmatprep.mubr.bf16.mxu1 %v2887_v47 }
 0xbeb   : > { %3226 = vmatprep.mubr.bf16.mxu0 %v2889_v48  ;;  %3186 = vmatmul.mubr.bf16.vlgmr.msra.gmra.mxu1 %v2886_v49 }
 0xbec   : > { %3227 = vmatmul.mubr.bf16.vlgmr.msra.gmra.mxu0 %v2888_v25 }
 0xcab   : > { %v4055_v16 = vpop.f32.mrf.mxu1 }
 0xcac   : > { %v4077_v26 = vpop.f32.mrf.mxu0 }
 0xcad   : > { %v4056_v6 = vpop.f32.mrf.mxu1 }
 0xcae   : > { %v4057_v32 = vadd.f32 %v4056_v6, %v4055_v16  ;;  %v4078_v37 = vpop.f32.mrf.mxu0 }
 0xcaf   : > { %v4058_v11 = vpop.f32.mrf.mxu1  ;;  %v4079_v51 = vadd.f32 %v4078_v37, %v4077_v26 }
 0xcb0   : > { %v3188_v50 = vadd.f32 %v4057_v32, %v3877_v20  ;;  %v4080_v52 = vpop.f32.mrf.mxu0 }
 0xcb1   : > { %v4059_v54 = vpop.f32.mrf.mxu1 }
 0xcb2   : > { %v3229_v55 = vadd.f32 %v4079_v51, %v3188_v50  ;;  %v4060_v56 = vadd.f32 %v4059_v54, %v4058_v11  ;;  %v4081_v57 = vpop.f32.mrf.mxu0 }
 0xcb3   : > { %v4082_v60 = vadd.f32 %v4081_v57, %v4080_v52 }
 0xcb4   : > { %v3242_v58 = vmul.f32 %v3910_v53, %v3229_v55  ;;  %v3191_v59 = vadd.f32 %v4060_v56, %v3877_v20 }
 0xcb6   : > { %v3244_v61 = vadd.f32 %v3242_v58, %v5336_v28  ;;  %v3232_v62 = vadd.f32 %v4082_v60, %v3191_v59 }
 0xcb8   : > { %3246 = vst [vmem:[#allocation2] sm:$0xff] %v3244_v61  ;;  %v3243_v63 = vmul.f32 %v3910_v53, %v3232_v62  ;;  %3251 = sbr.rel (%p3911_p12) target bundleno = 3803 (0xedb), region = 128 }
 0xcba   : > { %v3245_v0 = vadd.f32 %v3243_v63, %v5339_v33 }
 0xcbc   : > { %3247 = vst [vmem:[#allocation2 + $0x8] sm:$0xff] %v3245_v0 }
 0xcbd   : > { %v3254_v1 = vrot.slane %v3244_v61, 1  ;;  %v3255_v2 = vrot.slane %v3245_v0, 1  ;;  %vm3258_vm6 = vcmask 1043456   ;;  %vm3280_vm7 = vcmask 1041409   ;;  %v4488_v40 = vld [vmem:[#allocation7 + $0x74] ss:$8 sps:$4 sm:$0xff]  }
 0xcbe   : > { %vm3283_vm8 = vcmask 1041408   ;;  %v4490_v41 = vld [vmem:[#allocation7 + $0x70] ss:$8 sps:$4 sm:$0xff]   ;;  %3447 = vmatprep.subr.bf16.mxu0 %v4488_v40  ;;  %v4491_v42 = vld [vmem:[#allocation7 + $0x64] ss:$8 sps:$4 sm:$0xff]   ;;  %v4675_v6 = vmov 0  }
 0xcbf   : > { %v3259_v3 = vsel %vm3258_vm6, %v3254_v1, 0.0  ;;  %v3266_v4 = vsel %vm3258_vm6, %v3255_v2, 0.0  ;;  %3448 = vmatpush1.bf16.msra.mxu0 %v4490_v41  ;;  %v4493_v44 = vld [vmem:[#allocation7 + $0x60] ss:$8 sps:$4 sm:$0xff]   ;;  %v4494_v45 = vld [vmem:[#allocation7 + $0x54] ss:$8 sps:$4 sm:$0xff]   ;;  %3479 = vmatprep.mubr.bf16.mxu0 %v4675_v6 }
 0xcc0   : > { %v3260_v5 = vrot.slane %v3259_v3, 4  ;;  %v3267_v8 = vrot.slane %v3266_v4, 4  ;;  %3449 = vmatprep.subr.bf16.mxu0 %v4491_v42  ;;  %v4496_v46 = vld [vmem:[#allocation7 + $0x50] ss:$8 sps:$4 sm:$0xff]   ;;  %v4497_v47 = vld [vmem:[#allocation7 + $0x44] ss:$8 sps:$4 sm:$0xff]  }
 0xcc1   : > { %v4499_v48 = vld [vmem:[#allocation7 + $0x40] ss:$8 sps:$4 sm:$0xff]   ;;  %v4500_v49 = vld [vmem:[#allocation7 + $0x34] ss:$8 sps:$4 sm:$0xff]   ;;  %v4502_v25 = vld [vmem:[#allocation7 + $0x30] ss:$8 sps:$4 sm:$0xff]  }
 0xcc2   : > { %v3261_v9 = vadd.f32 %v3260_v5, %v3259_v3  ;;  %v3268_v10 = vadd.f32 %v3267_v8, %v3266_v4  ;;  %v4503_v16 = vld [vmem:[#allocation7 + $0x24] ss:$8 sps:$4 sm:$0xff]   ;;  %v4505_v26 = vld [vmem:[#allocation7 + $0x20] ss:$8 sps:$4 sm:$0xff]   ;;  %v4506_v20 = vld [vmem:[#allocation7 + $0x14] ss:$8 sps:$4 sm:$0xff]  }
 0xcc3   : > { %3450 = vmatpush1.bf16.msra.mxu0 %v4493_v44  ;;  %v4508_v32 = vld [vmem:[#allocation7 + $0x10] ss:$8 sps:$4 sm:$0xff]   ;;  %v4509_v37 = vld [vmem:[#allocation7 + $0x4] ss:$8 sps:$4 sm:$0xff]   ;;  %v4511_v11 = vld [vmem:[#allocation7] ss:$8 sps:$4 sm:$0xff]  }
 0xcc4   : > { %v3262_v12 = vrot.slane %v3261_v9, 2  ;;  %v3269_v28 = vrot.slane %v3268_v10, 2  ;;  %3451 = vmatprep.subr.bf16.mxu0 %v4494_v45  ;;  %v3912_v54 = vld [vmem:[%s5623_s28] ss:$0 sm:$0xff] }
 0xcc5   : > { %v3913_v57 = vld [vmem:[%s5624_s0] ss:$0 sm:$0xff] }
 0xcc6   : > { %v3263_v13 = vadd.f32 %v3262_v12, %v3261_v9  ;;  %v3270_v14 = vadd.f32 %v3269_v28, %v3268_v10  ;;  %v3347_v8 = vld [vmem:[#allocation9] sm:$0x3] }
 0xcc7   : > { %3452 = vmatpush1.bf16.msra.mxu0 %v4496_v46  ;;  %v3352_v9 = vrot.slane %v3347_v8, %v5223_v18  ;;  %v3356_v10 = vrot.slane %v3347_v8, %v5218_v7 }
 0xcc8   : > { %v3264_v15 = vrot.slane %v3263_v13, 1  ;;  %v3271_v22 = vrot.slane %v3270_v14, 1  ;;  %3453 = vmatprep.subr.bf16.mxu0 %v4497_v47 }
 0xcca   : > { %v3265_v33 = vadd.f32 %v3264_v15, %v3263_v13  ;;  %v3272_v17 = vadd.f32 %v3271_v22, %v3270_v14 }
 0xccb   : > { %3454 = vmatpush1.bf16.msra.mxu0 %v4499_v48 }
 0xccc   : > { %v3274_v19 = vmul.f32 0.25, %v3265_v33  ;;  %v3275_v21 = vmul.f32 0.25, %v3272_v17  ;;  %3455 = vmatprep.subr.bf16.mxu0 %v4500_v49 }
 0xcce   : > { %v3281_v23 = vsel %vm3280_vm7, %v3275_v21, %v3274_v19 }
 0xccf   : > { %v3284_v24 = vsel %vm3283_vm8, %v3281_v23, 0.0  ;;  %3456 = vmatpush1.bf16.msra.mxu0 %v4502_v25 }
 0xcd0   : > { %3285 = vadd.xlane.f32.xlu0 %v3284_v24  ;;  %3457 = vmatprep.subr.bf16.mxu0 %v4503_v16 }
 0xcd3   : > { %3458 = vmatpush1.bf16.msra.mxu0 %v4505_v26 }
 0xcd4   : > { %3459 = vmatprep.subr.bf16.mxu0 %v4506_v20 }
 0xcd7   : > { %3460 = vmatpush1.bf16.msra.mxu0 %v4508_v32 }
 0xcd8   : > { %3461 = vmatprep.subr.bf16.mxu0 %v4509_v37 }
 0xcdb   : > { %3462 = vmatpush1.bf16.msra.mxu0 %v4511_v11 }
 0xd59   : > { %v3286_v43 = vpop.xlane.xlu0 %3285 }
 0xd5a   : > { %v3287_v27 = vmul.f32 0.0078125, %v3286_v43 }
 0xd5c   : > { %v3289_v29 = vrot.slane %v3287_v27, 1  ;;  %v3292_v30 = vsub.f32 %v3274_v19, %v3287_v27 }
 0xd5e   : > { %v3293_v31 = vsub.f32 %v3275_v21, %v3289_v29  ;;  %v3294_v35 = vmul.f32 %v3292_v30, %v3292_v30 }
 0xd60   : > { %v3295_v34 = vmul.f32 %v3293_v31, %v3293_v31 }
 0xd62   : > { %v3298_v36 = vrot.slane %v3295_v34, 7 }
 0xd64   : > { %v3299_v38 = vsel %vm3280_vm7, %v3298_v36, %v3294_v35 }
 0xd65   : > { %v3301_v39 = vsel %vm3283_vm8, %v3299_v38, 0.0 }
 0xd66   : > { %3302 = vadd.xlane.f32.xlu0 %v3301_v39 }
 0xdef   : > { %v3303_v50 = vpop.xlane.xlu0 %3302 }
 0xdf0   : > { %v3304_v51 = vmul.f32 0.0078125, %v3303_v50 }
 0xdf2   : > { %v3305_v52 = vadd.f32 1e-12, %v3304_v51 }
 0xdf4   : > { %4512 = vrsqrt.f32 %v3305_v52 }
 0xe01   : > { %v4513_v53 = vpop.eup %4512 }
 0xe02   : > { %v3308_v55 = vrot.slane %v4513_v53, 1  ;;  %v3311_v56 = vmul.f32 %v4513_v53, %v3292_v30 }
 0xe04   : > { %v3312_v58 = vmul.f32 %v3308_v55, %v3293_v31  ;;  %v3319_v59 = vmul.f32 %v3912_v54, %v3311_v56 }
 0xe06   : > { %v3320_v60 = vmul.f32 %v3912_v54, %v3312_v58  ;;  %v3327_v61 = vadd.f32 %v3913_v57, %v3319_v59 }
 0xe08   : > { %v3328_v62 = vadd.f32 %v3913_v57, %v3320_v60  ;;  %v3329_v63 = vpack.c.bf16 %v3327_v61, %v3327_v61 }
 0xe0a   : > { %v3330_v0 = vpack.c.bf16 %v3328_v62, %v3328_v62  ;;  %v3361_v2 = vunpack.c.l.b16 %v3329_v63 }
 0xe0c   : > { %v3362_v1 = vunpack.c.l.b16 %v3330_v0 }
 0xe0e   : > { %v3363_v3 = vrot.slane %v3362_v1, 7 }
 0xe10   : > { %v3364_v4 = vsel %vm3280_vm7, %v3363_v3, %v3361_v2 }
 0xe11   : > { %v3365_v5 = vpack.c.b16 %v3364_v4, %v3364_v4 }
 0xe13   : > { %3480 = vmatmul.mubr.bf16.vlgmr.msra.gmra.mxu0 %v3365_v5 }
 0xed3   : > { %v3481_v12 = vpop.f32.mrf.mxu0 }
 0xed4   : > { %v3482_v13 = vadd.f32 %v3481_v12, %v3352_v9 }
 0xed5   : > { %v3483_v28 = vpop.f32.mrf.mxu0 }
 0xed6   : > { %v3484_v14 = vadd.f32 %v3483_v28, %v3356_v10 }
 0xed7   : > { %v3485_v15 = vpop.f32.mrf.mxu0 }
 0xed8   : > { %v3490_v22 = vcombine.low %v3482_v13, %v3484_v14 }
 0xed9   : > { %v3486_v33 = vpop.f32.mrf.mxu0 }
 0xeda   : > { %3930 = vst.sshfl [vmem:[#allocation10] sm:$0x33 pattern:$0x76325410] %v3490_v22 }
 0xedb PF: > { %p4205_p1 = scmp.eq.s32.totalorder %s4811_s4, 1  ;;  %s4676_s27 = smov [#allocation10]  }
 0xedc   : > { %s3507_s2 = sshll.u32 %s4676_s27, 4  ;;  %s3508_s2 = int_to_ptr.vmem [resolvable:$true] %s3507_s2 }
 0xedd   : > { %s4594_s29 = scalar_lea.vmem %s3508_s2, 64  ;;  %p4601_p2 = scmp.lt.s32.totalorder %s3508_s2, %s3508_s2 }
 0xede   : > { %p4595_p4 = scmp.ne.s32.totalorder %s3508_s2, %s4594_s29  ;;  %p4602_p8 = scmp.lt.s32.totalorder %s4594_s29, %s4594_s29 }
 0xee0   : > { %p4596_p9 = pnand %p4595_p4, %p4205_p1  ;;  %p4603_p10 = por %p4602_p8, %p4601_p2 }
 0xee2   : > { %p4597_p0 = pneg %p4596_p9 }
 0xee4   : > { %p4604_p7 = pnand %p4603_p10, %p4597_p0 }
 0xee6   : > { %4607 = shalt.err (!%p4604_p7)
}
 0xee7   : > { %s5625_s19 = sld [smem:[#allocation32_spill]] }
 0xeed   : > { %4186 = dma.vmem_to_hbm [thread:$0]  (%p4205_p1), %s3508_s2, 64, %s5625_s19, [#allocation6]  }
 0xeee   : > { %4643 = dma.done.wait (%p4205_p1), [#allocation6], 64  }
 0xeef   : > { %4645 = vsyncadd (%p4205_p1), [#allocation6], 4294967232 }
 0xef0 PF: > { %s5626_s30 = sld [smem:[#allocation16_spill]] }
 0xef1   : > { %s5627_s3 = sld [smem:[#allocation14_spill]] }
 0xef2   : > { %s5628_s28 = sld [smem:[#allocation15_spill]] }
 0xef3   : > { %s5629_s29 = sld [smem:[#allocation17_spill]] }
 0xef6   : > { %p34_p5 = scmp.ge.s32.totalorder %s5626_s30, 4  }
 0xef8   :  { %36 = sbr.rel (!%p34_p5) target bundleno = 20 (0x14), region = 206 }
 0xefd   :  { %3520 = vsyncpa [#allocation5], 1 }
 0xefe   :  { %3522 = vsyncpa [#allocation5 + $0x1], 1 }
 0xeff   :  { %3523 = vsyncpa [#allocation8], 1 }
 0xf00   :  { %3524 = vsyncpa [#allocation6], 1 }
 0xf01   :  { %3526 = vsyncpa [#allocation6 + $0x1], 1 }

</bundles_post_ra>
